<compile_context>
chip_gen: v5e
topology: v5e:2x2
jax: 0.10.0
libtpu: 0.0.40
codegen_flags: <defaults>
</compile_context>

<pallas_src>
import jax
import jax.numpy as jnp
import numpy as np
from jax.experimental import pallas as pl
from jax.experimental.pallas import tpu as pltpu


def prepare_conv_ps_params(w, b, upscale=2):
    """One-time, host-side weight/bias prep (hoisted out of the per-call jit).

    * flattens OIHW conv weights to a (9*Cin, Cout) matmul operand whose row
      index is (kh*3 + kw)*Cin + ci (matches the in-kernel im2col ordering),
    * permutes the output columns (and the bias) into PixelShuffle's
      (i, j, c) ordering so the post-kernel glue is a single transpose,
    * casts the weights to bf16 for the MXU.
    Depends only on (w, b): call once, reuse for every forward pass.
    """
    w = np.asarray(w, dtype=np.float32)
    b = np.asarray(b, dtype=np.float32)
    Cout, Cin, KH, KW = w.shape
    r = upscale
    C = Cout // (r * r)

    w_flat = np.transpose(w, (2, 3, 1, 0)).reshape(KH * KW * Cin, Cout)
    p = np.arange(Cout)
    i_idx = p // (r * C)
    j_idx = (p // C) % r
    c_idx = p % C
    perm = c_idx * (r * r) + i_idx * r + j_idx      # new col p <- old out-channel perm[p]
    w_perm = w_flat[:, perm]
    b_perm = b[perm].reshape(1, Cout)

    return (jnp.asarray(w_perm, dtype=jnp.bfloat16),
            jnp.asarray(b_perm, dtype=jnp.float32))


def pixelshuffle_forward(x, w_prepped, b_prepped):
    """Conv2d(64,256,k=3,s=1,p=1) + PixelShuffle(2) forward; NCHW in, NCHW out."""
    N, Cin, H, W = x.shape
    K, Cout = w_prepped.shape
    r = 2
    C = Cout // (r * r)
    M = N * H * W
    KH = KW = 3

    # Layout glue only: NCHW -> NHWC, zero pad (padding=1), bf16 at the boundary.
    x_nhwc = jnp.transpose(x, (0, 2, 3, 1))
    x_pad = jnp.pad(x_nhwc, ((0, 0), (1, 1), (1, 1), (0, 0))).astype(jnp.bfloat16)

    def kernel(x_ref, w_ref, b_ref, o_ref, slab_ref):
        # x_ref:    (N, H+2, W+2, Cin) bf16  padded NHWC activations
        # w_ref:    (K=9*Cin, Cout)    bf16  rows in (kh,kw,ci) order, cols in (i,j,c)
        # b_ref:    (1, Cout)          f32   permuted bias
        # o_ref:    (M, Cout)          bf16  conv output, columns already (i,j,c)
        # slab_ref: (M, K)             f32   VMEM scratch: im2col slab built in-kernel
        xv = x_ref[...].astype(jnp.float32)   # exact upcast; keeps clean (8,128) f32 tiling
        for kh in range(KH):
            for kw in range(KW):
                tap = kh * KW + kw
                t = xv[:, kh:kh + H, kw:kw + W, :]                # (N, H, W, Cin)
                slab_ref[:, tap * Cin:(tap + 1) * Cin] = t.reshape(M, Cin)
        # Single K=576 contraction on the MXU (do not split into 9 K=64 dots).
        acc = jnp.dot(slab_ref[...].astype(jnp.bfloat16), w_ref[...],
                      preferred_element_type=jnp.float32)
        o_ref[...] = (acc + b_ref[...]).astype(o_ref.dtype)

    cost = pl.CostEstimate(
        flops=2 * M * K * Cout,
        transcendentals=0,
        bytes_accessed=(N * (H + 2) * (W + 2) * Cin) * 2   # bf16 activations
                       + K * Cout * 2                       # bf16 weights
                       + Cout * 4                           # f32 bias
                       + M * Cout * 2,                      # bf16 output
    )

    out = pl.pallas_call(
        kernel,
        out_shape=jax.ShapeDtypeStruct((M, Cout), jnp.bfloat16),
        grid_spec=pltpu.PrefetchScalarGridSpec(
            num_scalar_prefetch=0,
            grid=(1,),                     # single step: DMA/latency bound at this size
            in_specs=[
                pl.BlockSpec((N, H + 2, W + 2, Cin), lambda n: (0, 0, 0, 0)),
                pl.BlockSpec((K, Cout), lambda n: (0, 0)),
                pl.BlockSpec((1, Cout), lambda n: (0, 0)),
            ],
            out_specs=pl.BlockSpec((M, Cout), lambda n: (0, 0)),
            scratch_shapes=[pltpu.VMEM((M, K), jnp.float32)],
        ),
        compiler_params=pltpu.CompilerParams(
            dimension_semantics=("arbitrary",)),
        cost_estimate=cost,
    )(x_pad, w_prepped, b_prepped)

    # Columns are already (i, j, c): a single transpose finishes PixelShuffle.
    # out[m, i*2C + j*C + c] == conv[n, c*4 + i*2 + j, h, w]
    out = out.reshape(N, H, W, r, r, C)              # (n, h, w, i, j, c)
    out = jnp.transpose(out, (0, 5, 1, 3, 2, 4))     # (n, c, h, i, w, j)
    out = out.reshape(N, C, H * r, W * r)
    # Keep the module's f32 NCHW interface (relayout above already ran on bf16).
    return out.astype(jnp.float32)


if __name__ == "__main__":
    key = jax.random.PRNGKey(0)
    k1, k2, k3 = jax.random.split(key, 3)

    # The module fixes Cin=64, Cout=256; small batch/spatial.
    N, Cin, H, W = 2, 64, 8, 8
    Cout = 256

    x = jax.random.normal(k1, (N, Cin, H, W), jnp.float32)
    w = jax.random.normal(k2, (Cout, Cin, 3, 3), jnp.float32) * 0.05
    b = jax.random.normal(k3, (Cout,), jnp.float32) * 0.05

    # One-time parameter prep, hoisted out of the per-call jit.
    w_prepped, b_prepped = prepare_conv_ps_params(w, b)

    fwd = jax.jit(pixelshuffle_forward)
    out = jax.block_until_ready(fwd(x, w_prepped, b_prepped))
    assert out.shape == (N, Cout // 4, H * 2, W * 2), out.shape

    # Pure-JAX fp32 reference with identical semantics to the PyTorch module.
    ref_conv = jax.lax.conv_general_dilated(
        x, w, window_strides=(1, 1), padding=((1, 1), (1, 1)),
        dimension_numbers=("NCHW", "OIHW", "NCHW"),
        precision=jax.lax.Precision.HIGHEST) + b.reshape(1, Cout, 1, 1)
    Cref = Cout // 4
    ref = ref_conv.reshape(N, Cref, 2, 2, H, W)
    ref = jnp.transpose(ref, (0, 1, 4, 2, 5, 3)).reshape(N, Cref, H * 2, W * 2)

    # bf16 activations/weights/output with f32 accumulation -> bf16-level tolerance.
    np.testing.assert_allclose(np.asarray(out), np.asarray(ref),
                               rtol=3e-2, atol=3e-2)

    print("KERNEL_OK")
</pallas_src>

<mosaic_0001>
module attributes {stable_mosaic.version = 11 : i64} {
  func.func @kernel(%arg0: i32, %arg1: memref<2x10x10x64xbf16, #tpu.memory_space<vmem>>, %arg2: memref<576x256xbf16, #tpu.memory_space<vmem>>, %arg3: memref<1x256xf32, #tpu.memory_space<vmem>>, %arg4: memref<128x256xbf16, #tpu.memory_space<vmem>>, %arg5: memref<128x576xf32, #tpu.memory_space<vmem>>) attributes {dimension_semantics = [#tpu.dimension_semantics<arbitrary>], iteration_bounds = array<i64: 1>, scalar_prefetch = 0 : i64, scratch_operands = 1 : i64, tpu.core_type = #tpu.core_type<tc>, window_params = [{pipeline_mode = #tpu.pipeline_mode<synchronous>, transform_indices = @transform_0, window_bounds = array<i64: 2, 10, 10, 64>}, {pipeline_mode = #tpu.pipeline_mode<synchronous>, transform_indices = @transform_1, window_bounds = array<i64: 576, 256>}, {pipeline_mode = #tpu.pipeline_mode<synchronous>, transform_indices = @transform_2, window_bounds = array<i64: 1, 256>}, {pipeline_mode = #tpu.pipeline_mode<synchronous>, transform_indices = @transform_3, window_bounds = array<i64: 128, 256>}]} {
    %c0 = arith.constant 0 : index
    %c0_0 = arith.constant 0 : index
    %c0_1 = arith.constant 0 : index
    %c0_2 = arith.constant 0 : index
    %0 = vector.load %arg1[%c0, %c0_0, %c0_1, %c0_2] : memref<2x10x10x64xbf16, #tpu.memory_space<vmem>>, vector<2x10x10x64xbf16>
    %1 = arith.extf %0 : vector<2x10x10x64xbf16> to vector<2x10x10x64xf32>
    %2 = vector.extract_strided_slice %1 {offsets = [0, 0, 0, 0], sizes = [2, 8, 8, 64], strides = [1, 1, 1, 1]} : vector<2x10x10x64xf32> to vector<2x8x8x64xf32>
    %3 = vector.shape_cast %2 : vector<2x8x8x64xf32> to vector<128x64xf32>
    %c0_3 = arith.constant 0 : index
    %c0_4 = arith.constant 0 : index
    %4 = vector.load %arg5[%c0_3, %c0_4] : memref<128x576xf32, #tpu.memory_space<vmem>>, vector<128x64xf32>
    tpu.vector_store %arg5[%c0_3, %c0_4], %3 {strides = array<i32>} : memref<128x576xf32, #tpu.memory_space<vmem>>, vector<128x64xf32>,
    %5 = vector.extract_strided_slice %1 {offsets = [0, 0, 1, 0], sizes = [2, 8, 8, 64], strides = [1, 1, 1, 1]} : vector<2x10x10x64xf32> to vector<2x8x8x64xf32>
    %6 = vector.shape_cast %5 : vector<2x8x8x64xf32> to vector<128x64xf32>
    %c0_5 = arith.constant 0 : index
    %c64 = arith.constant 64 : index
    %7 = vector.load %arg5[%c0_5, %c64] : memref<128x576xf32, #tpu.memory_space<vmem>>, vector<128x64xf32>
    tpu.vector_store %arg5[%c0_5, %c64], %6 {strides = array<i32>} : memref<128x576xf32, #tpu.memory_space<vmem>>, vector<128x64xf32>,
    %8 = vector.extract_strided_slice %1 {offsets = [0, 0, 2, 0], sizes = [2, 8, 8, 64], strides = [1, 1, 1, 1]} : vector<2x10x10x64xf32> to vector<2x8x8x64xf32>
    %9 = vector.shape_cast %8 : vector<2x8x8x64xf32> to vector<128x64xf32>
    %c0_6 = arith.constant 0 : index
    %c128 = arith.constant 128 : index
    %10 = vector.load %arg5[%c0_6, %c128] : memref<128x576xf32, #tpu.memory_space<vmem>>, vector<128x64xf32>
    tpu.vector_store %arg5[%c0_6, %c128], %9 {strides = array<i32>} : memref<128x576xf32, #tpu.memory_space<vmem>>, vector<128x64xf32>,
    %11 = vector.extract_strided_slice %1 {offsets = [0, 1, 0, 0], sizes = [2, 8, 8, 64], strides = [1, 1, 1, 1]} : vector<2x10x10x64xf32> to vector<2x8x8x64xf32>
    %12 = vector.shape_cast %11 : vector<2x8x8x64xf32> to vector<128x64xf32>
    %c0_7 = arith.constant 0 : index
    %c192 = arith.constant 192 : index
    %13 = vector.load %arg5[%c0_7, %c192] : memref<128x576xf32, #tpu.memory_space<vmem>>, vector<128x64xf32>
    tpu.vector_store %arg5[%c0_7, %c192], %12 {strides = array<i32>} : memref<128x576xf32, #tpu.memory_space<vmem>>, vector<128x64xf32>,
    %14 = vector.extract_strided_slice %1 {offsets = [0, 1, 1, 0], sizes = [2, 8, 8, 64], strides = [1, 1, 1, 1]} : vector<2x10x10x64xf32> to vector<2x8x8x64xf32>
    %15 = vector.shape_cast %14 : vector<2x8x8x64xf32> to vector<128x64xf32>
    %c0_8 = arith.constant 0 : index
    %c256 = arith.constant 256 : index
    %16 = vector.load %arg5[%c0_8, %c256] : memref<128x576xf32, #tpu.memory_space<vmem>>, vector<128x64xf32>
    tpu.vector_store %arg5[%c0_8, %c256], %15 {strides = array<i32>} : memref<128x576xf32, #tpu.memory_space<vmem>>, vector<128x64xf32>,
    %17 = vector.extract_strided_slice %1 {offsets = [0, 1, 2, 0], sizes = [2, 8, 8, 64], strides = [1, 1, 1, 1]} : vector<2x10x10x64xf32> to vector<2x8x8x64xf32>
    %18 = vector.shape_cast %17 : vector<2x8x8x64xf32> to vector<128x64xf32>
    %c0_9 = arith.constant 0 : index
    %c320 = arith.constant 320 : index
    %19 = vector.load %arg5[%c0_9, %c320] : memref<128x576xf32, #tpu.memory_space<vmem>>, vector<128x64xf32>
    tpu.vector_store %arg5[%c0_9, %c320], %18 {strides = array<i32>} : memref<128x576xf32, #tpu.memory_space<vmem>>, vector<128x64xf32>,
    %20 = vector.extract_strided_slice %1 {offsets = [0, 2, 0, 0], sizes = [2, 8, 8, 64], strides = [1, 1, 1, 1]} : vector<2x10x10x64xf32> to vector<2x8x8x64xf32>
    %21 = vector.shape_cast %20 : vector<2x8x8x64xf32> to vector<128x64xf32>
    %c0_10 = arith.constant 0 : index
    %c384 = arith.constant 384 : index
    %22 = vector.load %arg5[%c0_10, %c384] : memref<128x576xf32, #tpu.memory_space<vmem>>, vector<128x64xf32>
    tpu.vector_store %arg5[%c0_10, %c384], %21 {strides = array<i32>} : memref<128x576xf32, #tpu.memory_space<vmem>>, vector<128x64xf32>,
    %23 = vector.extract_strided_slice %1 {offsets = [0, 2, 1, 0], sizes = [2, 8, 8, 64], strides = [1, 1, 1, 1]} : vector<2x10x10x64xf32> to vector<2x8x8x64xf32>
    %24 = vector.shape_cast %23 : vector<2x8x8x64xf32> to vector<128x64xf32>
    %c0_11 = arith.constant 0 : index
    %c448 = arith.constant 448 : index
    %25 = vector.load %arg5[%c0_11, %c448] : memref<128x576xf32, #tpu.memory_space<vmem>>, vector<128x64xf32>
    tpu.vector_store %arg5[%c0_11, %c448], %24 {strides = array<i32>} : memref<128x576xf32, #tpu.memory_space<vmem>>, vector<128x64xf32>,
    %26 = vector.extract_strided_slice %1 {offsets = [0, 2, 2, 0], sizes = [2, 8, 8, 64], strides = [1, 1, 1, 1]} : vector<2x10x10x64xf32> to vector<2x8x8x64xf32>
    %27 = vector.shape_cast %26 : vector<2x8x8x64xf32> to vector<128x64xf32>
    %c0_12 = arith.constant 0 : index
    %c512 = arith.constant 512 : index
    %28 = vector.load %arg5[%c0_12, %c512] : memref<128x576xf32, #tpu.memory_space<vmem>>, vector<128x64xf32>
    tpu.vector_store %arg5[%c0_12, %c512], %27 {strides = array<i32>} : memref<128x576xf32, #tpu.memory_space<vmem>>, vector<128x64xf32>,
    %c0_13 = arith.constant 0 : index
    %c0_14 = arith.constant 0 : index
    %29 = vector.load %arg5[%c0_13, %c0_14] : memref<128x576xf32, #tpu.memory_space<vmem>>, vector<128x576xf32>
    %30 = arith.truncf %29 : vector<128x576xf32> to vector<128x576xbf16>
    %c0_15 = arith.constant 0 : index
    %c0_16 = arith.constant 0 : index
    %31 = vector.load %arg2[%c0_15, %c0_16] : memref<576x256xbf16, #tpu.memory_space<vmem>>, vector<576x256xbf16>
    %cst = arith.constant dense<0.000000e+00> : vector<128x256xf32>
    %32 = tpu.matmul %30, %31, %cst {dimension_numbers = #tpu.dot_dimension_numbers<[1], [0], [0], [1], [0, 0, 1, 1], [], []>} : vector<128x576xbf16>, vector<576x256xbf16>, vector<128x256xf32> -> vector<128x256xf32>
    %c0_17 = arith.constant 0 : index
    %c0_18 = arith.constant 0 : index
    %33 = vector.load %arg3[%c0_17, %c0_18] : memref<1x256xf32, #tpu.memory_space<vmem>>, vector<1x256xf32>
    %34 = vector.broadcast %33 : vector<1x256xf32> to vector<128x256xf32>
    %35 = arith.addf %32, %34 : vector<128x256xf32>
    %36 = arith.truncf %35 : vector<128x256xf32> to vector<128x256xbf16>
    %c0_19 = arith.constant 0 : index
    %c0_20 = arith.constant 0 : index
    %37 = vector.load %arg4[%c0_19, %c0_20] : memref<128x256xbf16, #tpu.memory_space<vmem>>, vector<128x256xbf16>
    tpu.vector_store %arg4[%c0_19, %c0_20], %36 {strides = array<i32>} : memref<128x256xbf16, #tpu.memory_space<vmem>>, vector<128x256xbf16>,
    return
  }
  func.func @transform_0(%arg0: i32) -> (i32, i32, i32, i32) {
    %c0_i32 = arith.constant 0 : i32
    %c0_i32_0 = arith.constant 0 : i32
    %c0_i32_1 = arith.constant 0 : i32
    %c0_i32_2 = arith.constant 0 : i32
    %c0_i32_3 = arith.constant 0 : i32
    return %c0_i32, %c0_i32_0, %c0_i32_1, %c0_i32_2 : i32, i32, i32, i32
  }
  func.func @transform_1(%arg0: i32) -> (i32, i32) {
    %c0_i32 = arith.constant 0 : i32
    %c0_i32_0 = arith.constant 0 : i32
    %c0_i32_1 = arith.constant 0 : i32
    return %c0_i32, %c0_i32_0 : i32, i32
  }
  func.func @transform_2(%arg0: i32) -> (i32, i32) {
    %c0_i32 = arith.constant 0 : i32
    %c0_i32_0 = arith.constant 0 : i32
    %c0_i32_1 = arith.constant 0 : i32
    return %c0_i32, %c0_i32_0 : i32, i32
  }
  func.func @transform_3(%arg0: i32) -> (i32, i32) {
    %c0_i32 = arith.constant 0 : i32
    %c0_i32_0 = arith.constant 0 : i32
    %c0_i32_1 = arith.constant 0 : i32
    return %c0_i32, %c0_i32_0 : i32, i32
  }
}

</mosaic_0001>

<bundles_post_ra>
// kernel: pixelshuffle_forward.1
= control target key start
LH: loop header
LB: loop body
LE: loop exit
PB: predicated region body
PF: predicated region fallthrough
CT: control target
= control target key end

     0   :  { %8 = vsyncpa [#allocation4], 0  ;;  %s2272_s15 = smov [#allocation3]   ;;  %s2273_s17 = smov 128   ;;  %s3308_s0 = inlined_call_operand.vmem [shape: bf16[2,10,10,64], index: 0, kind: input, shape index: {}]   ;;  %s3309_s1 = inlined_call_operand.hbm [shape: bf16[576,256], index: 1, kind: input, shape index: {}]   ;;  %s3310_s2 = inlined_call_operand.vmem [shape: f32[1,256], index: 2, kind: input, shape index: {}]   ;;  %s3311_s3 = inlined_call_operand.vmem [shape: bf16[128,256], index: 3, kind: output, shape index: {}]  }
   0x1   :  { %s15_s14 = sshll.u32 %s3309_s1, 4  ;;  %s17_s16 = sshll.u32 %s2272_s15, 4  ;;  %s16_s14 = int_to_ptr.hbm [resolvable:$true] %s15_s14  ;;  %s18_s16 = int_to_ptr.vmem [resolvable:$true] %s17_s16 }
   0x2   :  { %s2274_s18 = smov 8  }
   0x3   :  { %23 = dma.hbm_to_vmem [thread:$0]  %s16_s14, 9216, %s18_s16, [#allocation4], %s2273_s17, %s2273_s17, %s2274_s18  }
   0x4   :  { %2270 = dma.done.wait [#allocation4], 9216  }
   0x5   :  { %2271 = vsyncadd [#allocation4], 4294958080  ;;  %vm111_vm0 = vcmask 523264   ;;  %vm160_vm1 = vcmask 1046528   ;;  %v51_v0 = vld [vmem:[%s3308_s0 + $0x50] sm:$0xf] }
   0x6   :  { %v52_v1 = vld [vmem:[%s3308_s0 + $0x54] sm:$0x1]  ;;  %v53_v2 = vld [vmem:[%s3308_s0 + $0x58] sm:$0xf]  ;;  %v2311_v3 = vld [vmem:[%s3308_s0 + $0x5c] sm:$0x1]  ;;  %v91_v4 = vunpack.c.l.bf16 %v51_v0 }
   0x7   :  { %v92_v5 = vunpack.c.l.bf16 %v52_v1  ;;  %v2313_v6 = vunpack.c.l.bf16 %v53_v2  ;;  %v31_v7 = vld [vmem:[%s3308_s0] sm:$0xf]  ;;  %v32_v8 = vld [vmem:[%s3308_s0 + $0x4] sm:$0x1]  ;;  %v94_v9 = vunpack.c.l.bf16 %v2311_v3  ;;  %vm274_vm2 = vcmask 1045504   ;;  %s2275_s19 = smov 64  }
   0x8   :  { %v33_v10 = vld [vmem:[%s3308_s0 + $0x8] sm:$0xf]  ;;  %v2328_v11 = vld [vmem:[%s3308_s0 + $0xc] sm:$0x1]  ;;  %v71_v12 = vunpack.c.l.bf16 %v31_v7  ;;  %v72_v13 = vunpack.c.l.bf16 %v32_v8  ;;  %v185_v14 = vrot.slane %v91_v4, 1  ;;  %v299_v17 = vrot.slane %v91_v4, 2 }
   0x9   :  { %v186_v15 = vrot.slane %v92_v5, 1  ;;  %v188_v16 = vrot.slane %v2313_v6, 1  ;;  %120 = vst.msk [vmem:[#allocation2 + $0x140] sm:$0xff] %vm111_vm0, %v91_v4  ;;  %v55_v18 = vld [vmem:[%s3308_s0 + $0x60] sm:$0xf]  ;;  %v189_v19 = vrot.slane %v94_v9, 1  ;;  %v2339_v21 = vunpack.c.l.bf16 %v33_v10 }
   0xa   :  { %v300_v20 = vrot.slane %v92_v5, 2  ;;  %121 = vst.msk [vmem:[#allocation2 + $0x168] sm:$0xff] %vm111_vm0, %v2313_v6  ;;  %v74_v22 = vunpack.c.l.bf16 %v2328_v11  ;;  %v35_v23 = vld [vmem:[%s3308_s0 + $0x10] sm:$0xf]  ;;  %v161_v25 = vrot.slane %v71_v12, 1  ;;  %v162_v26 = vrot.slane %v72_v13, 1 }
   0xb   :  { %v187_v24 = vsel %vm160_vm1, %v185_v14, %v186_v15  ;;  %v275_v27 = vrot.slane %v71_v12, 2  ;;  %112 = vst.msk [vmem:[#allocation2] sm:$0xff] %vm111_vm0, %v71_v12  ;;  %v2350_v28 = vld [vmem:[%s3308_s0 + $0x14] sm:$0x1]  ;;  %v190_v29 = vsel %vm160_vm1, %v188_v16, %v189_v19  ;;  %v164_v31 = vrot.slane %v2339_v21, 1 }
   0xc   :  { %v301_v30 = vsel %vm274_vm2, %v299_v17, %v300_v20  ;;  %v165_v32 = vrot.slane %v74_v22, 1  ;;  %113 = vst.msk [vmem:[#allocation2 + $0x28] sm:$0xff] %vm111_vm0, %v2339_v21  ;;  %v37_v33 = vld [vmem:[%s3308_s0 + $0x18] sm:$0xf]  ;;  %v2116_v34 = vpack.i.bf16 %v190_v29, %v187_v24  ;;  %v163_v35 = vsel %vm160_vm1, %v161_v25, %v162_v26  ;;  %v2367_v37 = vld [vmem:[%s3308_s0 + $0x1c] sm:$0x1] }
   0xd   :  { %453 = vst.msk [vmem:[#allocation2 + $0x150] sm:$0xff] %vm111_vm0, %v190_v29  ;;  %v276_v36 = vrot.slane %v72_v13, 2  ;;  %v2371_v39 = vunpack.c.l.bf16 %v55_v18  ;;  %v76_v40 = vunpack.c.l.bf16 %v2350_v28  ;;  %v2374_v41 = vunpack.c.l.bf16 %v37_v33  ;;  %v41_v42 = vld [vmem:[%s3308_s0 + $0x28] sm:$0xf]  ;;  %v39_v47 = vld [vmem:[%s3308_s0 + $0x20] sm:$0xf] }
   0xe   :  { %347 = vst.msk [vmem:[#allocation2 + $0x148] sm:$0xff] %vm111_vm0, %v301_v30  ;;  %v166_v38 = vsel %vm160_vm1, %v164_v31, %v165_v32  ;;  %2117 = vrot.lane.b32.xlu0 %v2116_v34, %s2275_s19  ;;  %v2382_v45 = vunpack.c.l.bf16 %v35_v23  ;;  %v78_v46 = vunpack.c.l.bf16 %v2367_v37  ;;  %v2391_v48 = vld [vmem:[%s3308_s0 + $0x2c] sm:$0x1]  ;;  %v2396_v49 = vld [vmem:[%s3308_s0 + $0x64] sm:$0x1]  ;;  %v2423_v57 = vunpack.c.l.bf16 %v41_v42 }
   0xf   :  { %v277_v43 = vsel %vm274_vm2, %v275_v27, %v276_v36  ;;  %445 = vst.msk [vmem:[#allocation2 + $0x10] sm:$0xff] %vm111_vm0, %v166_v38  ;;  %v2126_v44 = vpack.i.bf16 %v166_v38, %v163_v35  ;;  %v170_v50 = vrot.slane %v2374_v41, 1  ;;  %v2403_v51 = vld [vmem:[%s3308_s0 + $0x24] sm:$0x1]  ;;  %v57_v52 = vld [vmem:[%s3308_s0 + $0x68] sm:$0xf]  ;;  %v82_v58 = vunpack.c.l.bf16 %v2391_v48 }
  0x10   :  { %339 = vst.msk [vmem:[#allocation2 + $0x8] sm:$0xff] %vm111_vm0, %v277_v43  ;;  %v167_v53 = vrot.slane %v2382_v45, 1  ;;  %v168_v54 = vrot.slane %v76_v40, 1  ;;  %v171_v55 = vrot.slane %v78_v46, 1  ;;  %v2419_v56 = vld [vmem:[%s3308_s0 + $0x6c] sm:$0x1]  ;;  %v96_v59 = vunpack.c.l.bf16 %v2396_v49 }
  0x11   :  { %2127 = vrot.lane.b32.xlu1 %v2126_v44, %s2275_s19  ;;  %122 = vst.msk [vmem:[#allocation2 + $0x190] sm:$0xff] %vm111_vm0, %v2371_v39  ;;  %v2427_v60 = vunpack.c.l.bf16 %v57_v52  ;;  %v2121_v61 = vpack.i.bf16 %v2371_v39, %v2313_v6  ;;  %v80_v62 = vunpack.c.l.bf16 %v2403_v51  ;;  %v2131_v63 = vpack.i.bf16 %v2382_v45, %v2339_v21  ;;  %v59_v18 = vld [vmem:[%s3308_s0 + $0x70] sm:$0xf]  ;;  %v2473_v20 = vld [vmem:[%s3308_s0 + $0x74] sm:$0x1] }
  0x12   :  { %539 = vst.msk [vmem:[#allocation2 + $0x158] sm:$0xff] %vm111_vm0, %v2371_v39  ;;  %v172_v0 = vsel %vm160_vm1, %v170_v50, %v171_v55  ;;  %v2439_v1 = vunpack.c.l.bf16 %v39_v47  ;;  %v98_v2 = vunpack.c.l.bf16 %v2419_v56  ;;  %v169_v4 = vsel %vm160_vm1, %v167_v53, %v168_v54  ;;  %v2478_v23 = vld [vmem:[%s3308_s0 + $0x7c] sm:$0x1]  ;;  %v61_v25 = vld [vmem:[%s3308_s0 + $0x78] sm:$0xf] }
  0x13   :  { %114 = vst.msk [vmem:[#allocation2 + $0x50] sm:$0xff] %vm111_vm0, %v2382_v45  ;;  %v191_v5 = vrot.slane %v2371_v39, 1  ;;  %v192_v7 = vrot.slane %v96_v59, 1  ;;  %v194_v8 = vrot.slane %v2427_v60, 1  ;;  %v176_v10 = vrot.slane %v2423_v57, 1 }
  0x14   :  { %531 = vst.msk [vmem:[#allocation2 + $0x18] sm:$0xff] %vm111_vm0, %v2382_v45  ;;  %v177_v12 = vrot.slane %v82_v58, 1  ;;  %v195_v13 = vrot.slane %v98_v2, 1  ;;  %v173_v14 = vrot.slane %v2439_v1, 1  ;;  %v174_v15 = vrot.slane %v80_v62, 1 }
  0x15   :  { %447 = vst.msk [vmem:[#allocation2 + $0x60] sm:$0xff] %vm111_vm0, %v172_v0  ;;  %v193_v16 = vsel %vm160_vm1, %v191_v5, %v192_v7  ;;  %v2146_v26 = vpack.i.bf16 %v172_v0, %v169_v4  ;;  %v63_v29 = vld [vmem:[%s3308_s0 + $0x80] sm:$0xf]  ;;  %v2497_v30 = vunpack.c.l.bf16 %v59_v18  ;;  %v2502_v31 = vld [vmem:[%s3308_s0 + $0x84] sm:$0x1]  ;;  %v100_v34 = vunpack.c.l.bf16 %v2473_v20 }
  0x16   :  { %446 = vst.msk [vmem:[#allocation2 + $0x38] sm:$0xff] %vm111_vm0, %v169_v4  ;;  %2122 = vrot.lane.b32.xlu0 %v2121_v61, %s2275_s19  ;;  %v196_v17 = vsel %vm160_vm1, %v194_v8, %v195_v13  ;;  %v2483_v24 = vsel %vm160_vm1, %v176_v10, %v177_v12  ;;  %v2489_v27 = vsel %vm160_vm1, %v173_v14, %v174_v15  ;;  %v65_v32 = vld [vmem:[%s3308_s0 + $0x88] sm:$0xf]  ;;  %v2512_v33 = vld [vmem:[%s3308_s0 + $0x8c] sm:$0x1]  ;;  %v102_v35 = vunpack.c.l.bf16 %v2478_v23 }
  0x17   :  { %115 = vst.msk [vmem:[#allocation2 + $0x78] sm:$0xff] %vm111_vm0, %v2374_v41  ;;  %v2136_v19 = vpack.i.bf16 %v196_v17, %v193_v16  ;;  %v2151_v36 = vpack.i.bf16 %v2439_v1, %v2374_v41  ;;  %v2522_v38 = vunpack.c.l.bf16 %v61_v25  ;;  %v2524_v42 = vunpack.c.l.bf16 %v63_v29  ;;  %v1778_v52 = vld [vmem:[#allocation3 + $0x70] sm:$0xf]  ;;  %v2039_v53 = vld [vmem:[#allocation3 + $0x74] sm:$0xf0] }
  0x18   :  { %532 = vst.msk [vmem:[#allocation2 + $0x40] sm:$0xff] %vm111_vm0, %v2374_v41  ;;  %v2141_v43 = vpack.i.bf16 %v2497_v30, %v2427_v60  ;;  %v104_v44 = vunpack.c.l.bf16 %v2502_v31  ;;  %v2531_v47 = vunpack.c.l.bf16 %v65_v32  ;;  %v106_v50 = vunpack.c.l.bf16 %v2512_v33  ;;  %v1770_v0 = vld [vmem:[#allocation3 + $0x60] sm:$0xf]  ;;  %v2037_v4 = vld [vmem:[#allocation3 + $0x64] sm:$0xf0] }
  0x19   :  { %2132 = vrot.lane.b32.xlu1 %v2131_v63, %s2275_s19  ;;  %116 = vst.msk [vmem:[#allocation2 + $0xa0] sm:$0xff] %vm111_vm0, %v2439_v1  ;;  %2137 = vrot.lane.b32.xlu2 %v2136_v19, %s2275_s19  ;;  %v197_v54 = vrot.slane %v2497_v30, 1  ;;  %v198_v55 = vrot.slane %v100_v34, 1  ;;  %v200_v61 = vrot.slane %v2522_v38, 1  ;;  %v201_v63 = vrot.slane %v102_v35, 1 }
  0x1a   :  { %533 = vst.msk [vmem:[#allocation2 + $0x68] sm:$0xff] %vm111_vm0, %v2439_v1  ;;  %v203_v5 = vrot.slane %v2524_v42, 1  ;;  %v1779_v7 = vor.u32 %v2039_v53, %v1778_v52  ;;  %v1842_v8 = vld [vmem:[#allocation3 + $0xf0] sm:$0xf]  ;;  %v2161_v10 = vpack.i.bf16 %v2524_v42, %v2522_v38  ;;  %v204_v12 = vrot.slane %v104_v44, 1 }
  0x1b   :  { %449 = vst.msk [vmem:[#allocation2 + $0xb0] sm:$0xff] %vm111_vm0, %v2483_v24  ;;  %v206_v13 = vrot.slane %v2531_v47, 1  ;;  %v207_v14 = vrot.slane %v106_v50, 1  ;;  %v2055_v15 = vld [vmem:[#allocation3 + $0xf4] sm:$0xf0]  ;;  %v1771_v19 = vor.u32 %v2037_v4, %v1770_v0  ;;  %vm257_vm3 = vcmask 1048064  }
  0x1c   :  { %448 = vst.msk [vmem:[#allocation2 + $0x88] sm:$0xff] %vm111_vm0, %v2489_v27  ;;  %v67_v18 = vld [vmem:[%s3308_s0 + $0x90] sm:$0xf]  ;;  %1193 = vmatpush.bf16.msra.mxu0 %v1779_v7  ;;  %2096 = vmatpush.bf16.msra.mxu2 %v1779_v7  ;;  %v2035_v29 = vld [vmem:[#allocation3 + $0x54] sm:$0xf0]  ;;  %v1843_v32 = vor.u32 %v2055_v15, %v1842_v8 }
  0x1d   :  { %117 = vst.msk [vmem:[#allocation2 + $0xc8] sm:$0xff] %vm111_vm0, %v2423_v57  ;;  %v1762_v25 = vld [vmem:[#allocation3 + $0x50] sm:$0xf]  ;;  %v2053_v52 = vld [vmem:[#allocation3 + $0xe4] sm:$0xf0] }
  0x1e   :  { %534 = vst.msk [vmem:[#allocation2 + $0x90] sm:$0xff] %vm111_vm0, %v2423_v57  ;;  %2147 = vrot.lane.b32.xlu0 %v2146_v26, %s2275_s19  ;;  %v2166_v26 = vpack.i.bf16 %v2483_v24, %v2489_v27  ;;  %v205_v24 = vsel %vm160_vm1, %v203_v5, %v204_v12  ;;  %v2580_v53 = vld [vmem:[%s3308_s0 + $0x34] sm:$0x1]  ;;  %1242 = vmatpush.bf16.msra.mxu1 %v1843_v32  ;;  %v1826_v0 = vld [vmem:[#allocation3 + $0xd0] sm:$0xf]  ;;  %v2592_v5 = vunpack.c.l.bf16 %v67_v18 }
  0x1f   :  { %455 = vst.msk [vmem:[#allocation2 + $0x1a0] sm:$0xff] %vm111_vm0, %v196_v17  ;;  %v202_v17 = vsel %vm160_vm1, %v200_v61, %v201_v63  ;;  %v1763_v61 = vor.u32 %v2035_v29, %v1762_v25  ;;  %v2051_v4 = vld [vmem:[#allocation3 + $0xd4] sm:$0xf0]  ;;  %2104 = vmatpush.bf16.msra.mxu3 %v1843_v32  ;;  %v1754_v7 = vld [vmem:[#allocation3 + $0x40] sm:$0xf]  ;;  %v84_v18 = vunpack.c.l.bf16 %v2580_v53 }
  0x20   :  { %454 = vst.msk [vmem:[#allocation2 + $0x178] sm:$0xff] %vm111_vm0, %v193_v16  ;;  %v199_v16 = vsel %vm160_vm1, %v197_v54, %v198_v55  ;;  %v2585_v54 = vld [vmem:[%s3308_s0 + $0x3c] sm:$0x1]  ;;  %v208_v55 = vsel %vm160_vm1, %v206_v13, %v207_v14  ;;  %1194 = vmatpush.bf16.msra.mxu0 %v1771_v19  ;;  %2097 = vmatpush.bf16.msra.mxu2 %v1771_v19  ;;  %v2033_v8 = vld [vmem:[#allocation3 + $0x44] sm:$0xf0] }
  0x21   :  { %2152 = vrot.lane.b32.xlu1 %v2151_v36, %s2275_s19  ;;  %123 = vst.msk [vmem:[#allocation2 + $0x1b8] sm:$0xff] %vm111_vm0, %v2427_v60  ;;  %2142 = vrot.lane.b32.xlu2 %v2141_v43, %s2275_s19  ;;  %v1834_v36 = vld [vmem:[#allocation3 + $0xe0] sm:$0xf]  ;;  %v43_v43 = vld [vmem:[%s3308_s0 + $0x30] sm:$0xf]  ;;  %v2156_v27 = vpack.i.bf16 %v202_v17, %v199_v16  ;;  %v2176_v12 = vpack.i.bf16 %v208_v55, %v205_v24  ;;  %v86_v19 = vunpack.c.l.bf16 %v2585_v54 }
  0x22   :  { %540 = vst.msk [vmem:[#allocation2 + $0x180] sm:$0xff] %vm111_vm0, %v2427_v60  ;;  %v1835_v63 = vor.u32 %v2053_v52, %v1834_v36  ;;  %v2601_v13 = vunpack.c.l.bf16 %v43_v43  ;;  %v1827_v14 = vor.u32 %v2051_v4, %v1826_v0  ;;  %v47_v15 = vld [vmem:[%s3308_s0 + $0x40] sm:$0xf]  ;;  %v1755_v25 = vor.u32 %v2033_v8, %v1754_v7  ;;  %v1746_v32 = vld [vmem:[#allocation3 + $0x30] sm:$0xf] }
  0x23   :  { %125 = vst.msk [vmem:[#allocation2 + $0x208] sm:$0xff] %vm111_vm0, %v2522_v38  ;;  %v2181_v29 = vpack.i.bf16 %v2592_v5, %v2531_v47  ;;  %v2031_v36 = vld [vmem:[#allocation3 + $0x34] sm:$0xf0]  ;;  %v278_v43 = vrot.slane %v2339_v21, 2  ;;  %v279_v52 = vrot.slane %v74_v22, 2  ;;  %v180_v22 = vrot.slane %v84_v18, 1 }
  0x24   :  { %126 = vst.msk [vmem:[#allocation2 + $0x230] sm:$0xff] %vm111_vm0, %v2524_v42  ;;  %1243 = vmatpush.bf16.msra.mxu1 %v1835_v63  ;;  %1195 = vmatpush.bf16.msra.mxu0 %v1763_v61  ;;  %v179_v21 = vrot.slane %v2601_v13, 1  ;;  %v2633_v11 = vld [vmem:[%s3308_s0 + $0x44] sm:$0x1]  ;;  %v291_v0 = vrot.slane %v82_v58, 2  ;;  %v293_v8 = vrot.slane %v2601_v13, 2 }
  0x25   :  { %542 = vst.msk [vmem:[#allocation2 + $0x1d0] sm:$0xff] %vm111_vm0, %v2522_v38  ;;  %2098 = vmatpush.bf16.msra.mxu2 %v1763_v61  ;;  %2105 = vmatpush.bf16.msra.mxu3 %v1835_v63  ;;  %v280_v53 = vsel %vm274_vm2, %v278_v43, %v279_v52  ;;  %v290_v63 = vrot.slane %v2423_v57, 2  ;;  %v2029_v43 = vld [vmem:[#allocation3 + $0x24] sm:$0xf0]  ;;  %v1818_v52 = vld [vmem:[#allocation3 + $0xc0] sm:$0xf] }
  0x26   :  { %543 = vst.msk [vmem:[#allocation2 + $0x1f8] sm:$0xff] %vm111_vm0, %v2524_v42  ;;  %2162 = vrot.lane.b32.xlu0 %v2161_v10, %s2275_s19  ;;  %v45_v10 = vld [vmem:[%s3308_s0 + $0x38] sm:$0xf]  ;;  %v181_v4 = vsel %vm160_vm1, %v179_v21, %v180_v22  ;;  %v1730_v21 = vld [vmem:[#allocation3 + $0x10] sm:$0xf] }
  0x27   :  { %124 = vst.msk [vmem:[#allocation2 + $0x1e0] sm:$0xff] %vm111_vm0, %v2497_v30  ;;  %v2027_v22 = vld [vmem:[#allocation3 + $0x14] sm:$0xf0] }
  0x28   :  { %541 = vst.msk [vmem:[#allocation2 + $0x1a8] sm:$0xff] %vm111_vm0, %v2497_v30  ;;  %1244 = vmatpush.bf16.msra.mxu1 %v1827_v14  ;;  %1196 = vmatpush.bf16.msra.mxu0 %v1755_v25 }
  0x29   :  { %2167 = vrot.lane.b32.xlu1 %v2166_v26, %s2275_s19  ;;  %459 = vst.msk [vmem:[#allocation2 + $0x240] sm:$0xff] %vm111_vm0, %v208_v55  ;;  %2157 = vrot.lane.b32.xlu2 %v2156_v27, %s2275_s19  ;;  %v2611_v26 = vunpack.c.l.bf16 %v45_v10  ;;  %v2623_v27 = vunpack.c.l.bf16 %v47_v15  ;;  %v88_v55 = vunpack.c.l.bf16 %v2633_v11  ;;  %v294_v10 = vrot.slane %v84_v18, 2  ;;  %v1962_v11 = vld [vmem:[#allocation3 + $0x1e0] sm:$0xf] }
  0x2a   :  { %458 = vst.msk [vmem:[#allocation2 + $0x218] sm:$0xff] %vm111_vm0, %v205_v24  ;;  %v281_v24 = vrot.slane %v2382_v45, 2  ;;  %2099 = vmatpush.bf16.msra.mxu2 %v1755_v25  ;;  %v1747_v45 = vor.u32 %v2031_v36, %v1746_v32  ;;  %2106 = vmatpush.bf16.msra.mxu3 %v1827_v14  ;;  %v292_v15 = vsel %vm274_vm2, %v290_v63, %v291_v0  ;;  %v284_v18 = vrot.slane %v2374_v41, 2  ;;  %v1738_v36 = vld [vmem:[#allocation3 + $0x20] sm:$0xf] }
  0x2b   :  { %127 = vst.msk [vmem:[#allocation2 + $0x258] sm:$0xff] %vm111_vm0, %v2531_v47  ;;  %v182_v28 = vrot.slane %v2611_v26, 1  ;;  %v2191_v61 = vpack.i.bf16 %v2623_v27, %v2611_v26  ;;  %v296_v48 = vrot.slane %v2611_v26, 2  ;;  %v461_v58 = vrot.slane %v2623_v27, 2  ;;  %v1802_v63 = vld [vmem:[#allocation3 + $0xa0] sm:$0xf] }
  0x2c   :  { %544 = vst.msk [vmem:[#allocation2 + $0x220] sm:$0xff] %vm111_vm0, %v2531_v47  ;;  %1197 = vmatpush.bf16.msra.mxu0 %v1747_v45  ;;  %v462_v14 = vrot.slane %v88_v55, 2  ;;  %v295_v25 = vsel %vm274_vm2, %v293_v8, %v294_v10  ;;  %v303_v8 = vrot.slane %v94_v9, 2  ;;  %v1786_v9 = vld [vmem:[#allocation3 + $0x80] sm:$0xf] }
  0x2d   :  { %457 = vst.msk [vmem:[#allocation2 + $0x1f0] sm:$0xff] %vm111_vm0, %v202_v17  ;;  %v282_v17 = vrot.slane %v76_v40, 2  ;;  %v183_v40 = vrot.slane %v86_v19, 1  ;;  %v2206_v37 = vpack.i.bf16 %v295_v25, %v292_v15 }
  0x2e   :  { %456 = vst.msk [vmem:[#allocation2 + $0x1c8] sm:$0xff] %vm111_vm0, %v199_v16  ;;  %2177 = vrot.lane.b32.xlu0 %v2176_v12, %s2275_s19  ;;  %v2171_v16 = vpack.i.bf16 %v2601_v13, %v2423_v57  ;;  %2100 = vmatpush.bf16.msra.mxu2 %v1747_v45  ;;  %v297_v57 = vrot.slane %v86_v19, 2  ;;  %v285_v19 = vrot.slane %v78_v46, 2  ;;  %v463_v32 = vsel %vm274_vm2, %v461_v58, %v462_v14  ;;  %v2047_v45 = vld [vmem:[#allocation3 + $0xb4] sm:$0xf0] }
  0x2f   :  { %119 = vst.msk [vmem:[#allocation2 + $0x118] sm:$0xff] %vm111_vm0, %v2611_v26  ;;  %v283_v54 = vsel %vm274_vm2, %v281_v24, %v282_v17  ;;  %v184_v7 = vsel %vm160_vm1, %v182_v28, %v183_v40  ;;  %v1739_v24 = vor.u32 %v2029_v43, %v1738_v36  ;;  %v2049_v17 = vld [vmem:[#allocation3 + $0xc4] sm:$0xf0]  ;;  %v1810_v28 = vld [vmem:[#allocation3 + $0xb0] sm:$0xf]  ;;  %v1731_v40 = vor.u32 %v2027_v22, %v1730_v21 }
  0x30   :  { %536 = vst.msk [vmem:[#allocation2 + $0xe0] sm:$0xff] %vm111_vm0, %v2611_v26  ;;  %v2196_v12 = vpack.i.bf16 %v283_v54, %v280_v53  ;;  %v287_v26 = vrot.slane %v2439_v1, 2  ;;  %v298_v41 = vsel %vm274_vm2, %v296_v48, %v297_v57  ;;  %v286_v46 = vsel %vm274_vm2, %v284_v18, %v285_v19  ;;  %v1794_v58 = vld [vmem:[#allocation3 + $0x90] sm:$0xf]  ;;  %v2043_v14 = vld [vmem:[#allocation3 + $0x94] sm:$0xf0] }
  0x31   :  { %537 = vst.msk [vmem:[#allocation2 + $0x108] sm:$0xff] %vm111_vm0, %v2623_v27  ;;  %2182 = vrot.lane.b32.xlu1 %v2181_v29, %s2275_s19  ;;  %2172 = vrot.lane.b32.xlu2 %v2171_v16, %s2275_s19  ;;  %v288_v29 = vrot.slane %v80_v62, 2  ;;  %v2211_v62 = vpack.i.bf16 %v463_v32, %v298_v41  ;;  %v1819_v16 = vor.u32 %v2049_v17, %v1818_v52  ;;  %v306_v48 = vrot.slane %v96_v59, 2  ;;  %v2071_v19 = vld [vmem:[#allocation3 + $0x174] sm:$0xf0] }
  0x32   :  { %545 = vst.msk [vmem:[#allocation2 + $0x248] sm:$0xff] %vm111_vm0, %v2592_v5  ;;  %1198 = vmatpush.bf16.msra.mxu0 %v1739_v24  ;;  %2101 = vmatpush.bf16.msra.mxu2 %v1739_v24  ;;  %v1795_v3 = vor.u32 %v2043_v14, %v1794_v58  ;;  %v308_v36 = vrot.slane %v2427_v60, 2  ;;  %v309_v24 = vrot.slane %v98_v2, 2  ;;  %v424_v21 = vrot.slane %v88_v55, 1  ;;  %v2085_v55 = vld [vmem:[#allocation3 + $0x1e4] sm:$0xf0] }
  0x33   :  { %118 = vst.msk [vmem:[#allocation2 + $0xf0] sm:$0xff] %vm111_vm0, %v2601_v13  ;;  %v289_v51 = vsel %vm274_vm2, %v287_v26, %v288_v29  ;;  %1245 = vmatpush.bf16.msra.mxu1 %v1819_v16  ;;  %2107 = vmatpush.bf16.msra.mxu3 %v1819_v16  ;;  %v1970_v29 = vld [vmem:[#allocation3 + $0x1f0] sm:$0xf]  ;;  %v423_v16 = vrot.slane %v2623_v27, 1  ;;  %v311_v22 = vrot.slane %v2497_v30, 2 }
  0x34   :  { %535 = vst.msk [vmem:[#allocation2 + $0xb8] sm:$0xff] %vm111_vm0, %v2601_v13  ;;  %v2186_v13 = vpack.i.bf16 %v184_v7, %v181_v4  ;;  %v2201_v1 = vpack.i.bf16 %v289_v51, %v286_v46  ;;  %v2734_v2 = vsel %vm274_vm2, %v308_v36, %v309_v24 }
  0x35   :  { %341 = vst.msk [vmem:[#allocation2 + $0x58] sm:$0xff] %vm111_vm0, %v283_v54  ;;  %v425_v56 = vsel %vm160_vm1, %v423_v16, %v424_v21 }
  0x36   :  { %595 = vst.msk [vmem:[#allocation2 + $0x20] sm:$0xff] %vm111_vm0, %v283_v54  ;;  %2192 = vrot.lane.b32.xlu0 %v2191_v61, %s2275_s19  ;;  %1199 = vmatpush.bf16.msra.mxu0 %v1731_v40  ;;  %v1722_v54 = vld [vmem:[#allocation3] sm:$0xf]  ;;  %v2025_v61 = vld [vmem:[#allocation3 + $0x4] sm:$0xf0] }
  0x37   :  { %340 = vst.msk [vmem:[#allocation2 + $0x30] sm:$0xff] %vm111_vm0, %v280_v53  ;;  %v1811_v53 = vor.u32 %v2047_v45, %v1810_v28  ;;  %2102 = vmatpush.bf16.msra.mxu2 %v1731_v40  ;;  %v1723_v0 = vor.u32 %v2025_v61, %v1722_v54  ;;  %v312_v28 = vrot.slane %v100_v34, 2 }
  0x38   :  { %451 = vst.msk [vmem:[#allocation2 + $0x100] sm:$0xff] %vm111_vm0, %v184_v7  ;;  %v302_v7 = vrot.slane %v2313_v6, 2 }
  0x39   :  { %2197 = vrot.lane.b32.xlu1 %v2196_v12, %s2275_s19  ;;  %450 = vst.msk [vmem:[#allocation2 + $0xd8] sm:$0xff] %vm111_vm0, %v181_v4  ;;  %2187 = vrot.lane.b32.xlu2 %v2186_v13, %s2275_s19  ;;  %v2045_v4 = vld [vmem:[#allocation3 + $0xa4] sm:$0xf0]  ;;  %v305_v12 = vrot.slane %v2371_v39, 2  ;;  %v313_v27 = vsel %vm274_vm2, %v311_v22, %v312_v28 }
  0x3a   :  { %345 = vst.msk [vmem:[#allocation2 + $0xf8] sm:$0xff] %vm111_vm0, %v295_v25  ;;  %1246 = vmatpush.bf16.msra.mxu1 %v1811_v53  ;;  %2108 = vmatpush.bf16.msra.mxu3 %v1811_v53  ;;  %v1803_v10 = vor.u32 %v2045_v4, %v1802_v63  ;;  %v304_v57 = vsel %vm274_vm2, %v302_v7, %v303_v8  ;;  %v2041_v39 = vld [vmem:[#allocation3 + $0x84] sm:$0xf0]  ;;  %v2002_v4 = vld [vmem:[#allocation3 + $0x230] sm:$0xf] }
  0x3b   :  { %599 = vst.msk [vmem:[#allocation2 + $0xc0] sm:$0xff] %vm111_vm0, %v295_v25  ;;  %1200 = vmatpush.bf16.msra.mxu0 %v1723_v0  ;;  %2103 = vmatpush.bf16.msra.mxu2 %v1723_v0  ;;  %v307_v13 = vsel %vm274_vm2, %v305_v12, %v306_v48  ;;  %v1787_v49 = vor.u32 %v2041_v39, %v1786_v9  ;;  %v1906_v25 = vld [vmem:[#allocation3 + $0x170] sm:$0xf]  ;;  %v2095_v7 = vld [vmem:[#allocation3 + $0x234] sm:$0xf0] }
  0x3c   :  { %344 = vst.msk [vmem:[#allocation2 + $0xd0] sm:$0xff] %vm111_vm0, %v292_v15  ;;  %v2221_v6 = vpack.i.bf16 %v307_v13, %v304_v57  ;;  %v1907_v26 = vor.u32 %v2071_v19, %v1906_v25  ;;  %v2226_v20 = vpack.i.bf16 %v313_v27, %v2734_v2  ;;  %v1963_v0 = vor.u32 %v2085_v55, %v1962_v11  ;;  %v2038_v48 = vld [vmem:[#allocation3 + $0x74] sm:$0xf]  ;;  %v2093_v11 = vld [vmem:[#allocation3 + $0x224] sm:$0xf0] }
  0x3d   :  { %598 = vst.msk [vmem:[#allocation2 + $0x98] sm:$0xff] %vm111_vm0, %v292_v15 }
  0x3e   :  { %343 = vst.msk [vmem:[#allocation2 + $0xa8] sm:$0xff] %vm111_vm0, %v289_v51  ;;  %2207 = vrot.lane.b32.xlu0 %v2206_v37, %s2275_s19  ;;  %1247 = vmatpush.bf16.msra.mxu1 %v1803_v10  ;;  %v1898_v37 = vld [vmem:[#allocation3 + $0x160] sm:$0xf] }
  0x3f   :  { %597 = vst.msk [vmem:[#allocation2 + $0x70] sm:$0xff] %vm111_vm0, %v289_v51  ;;  %2109 = vmatpush.bf16.msra.mxu3 %v1803_v10  ;;  %1291 = vmatpush.bf16.msrb.mxu2 %v1907_v26  ;;  %v2003_v10 = vor.u32 %v2095_v7, %v2002_v4 }
  0x40   :  { %342 = vst.msk [vmem:[#allocation2 + $0x80] sm:$0xff] %vm111_vm0, %v286_v46 }
  0x41   :  { %596 = vst.msk [vmem:[#allocation2 + $0x48] sm:$0xff] %vm111_vm0, %v286_v46  ;;  %2212 = vrot.lane.b32.xlu1 %v2211_v62, %s2275_s19  ;;  %2202 = vrot.lane.b32.xlu2 %v2201_v1, %s2275_s19  ;;  %v2069_v46 = vld [vmem:[#allocation3 + $0x164] sm:$0xf0]  ;;  %v50_v1 = vld [vmem:[%s3308_s0 + $0x4c] sm:$0x1] }
  0x42   :  { %601 = vst.msk [vmem:[#allocation2 + $0x110] sm:$0xff] %vm111_vm0, %v463_v32  ;;  %1248 = vmatpush.bf16.msra.mxu1 %v1795_v3  ;;  %v1899_v51 = vor.u32 %v2069_v46, %v1898_v37  ;;  %v49_v62 = vld [vmem:[%s3308_s0 + $0x48] sm:$0xf]  ;;  %v90_v52 = vunpack.c.l.bf16 %v50_v1  ;;  %1393 = vmatpush.bf16.msrb.mxu0 %v2003_v10  ;;  %v2063_v10 = vld [vmem:[#allocation3 + $0x134] sm:$0xf0] }
  0x43   :  { %346 = vst.msk [vmem:[#allocation2 + $0x120] sm:$0xff] %vm111_vm0, %v298_v41  ;;  %2110 = vmatpush.bf16.msra.mxu3 %v1795_v3  ;;  %v89_v43 = vunpack.c.l.bf16 %v49_v62  ;;  %v1890_v3 = vld [vmem:[#allocation3 + $0x150] sm:$0xf]  ;;  %v1882_v62 = vld [vmem:[#allocation3 + $0x140] sm:$0xf] }
  0x44   :  { %600 = vst.msk [vmem:[#allocation2 + $0xe8] sm:$0xff] %vm111_vm0, %v298_v41  ;;  %v2087_v41 = vld [vmem:[#allocation3 + $0x1f4] sm:$0xf0]  ;;  %1292 = vmatpush.bf16.msrb.mxu2 %v1899_v51  ;;  %v552_v45 = vrot.slane %v90_v52, 1  ;;  %v586_v12 = vrot.slane %v90_v52, 2 }
  0x45   :  { %348 = vst.msk [vmem:[#allocation2 + $0x170] sm:$0xff] %vm111_vm0, %v304_v57  ;;  %v1971_v32 = vor.u32 %v2087_v41, %v1970_v29  ;;  %v551_v40 = vrot.slane %v89_v43, 1  ;;  %v585_v53 = vrot.slane %v89_v43, 2  ;;  %v1780_v57 = vld [vmem:[#allocation3 + $0x78] sm:$0xf0] }
  0x46   :  { %349 = vst.msk [vmem:[#allocation2 + $0x198] sm:$0xff] %vm111_vm0, %v307_v13  ;;  %2222 = vrot.lane.b32.xlu0 %v2221_v6, %s2275_s19  ;;  %1249 = vmatpush.bf16.msra.mxu1 %v1787_v49  ;;  %v2067_v6 = vld [vmem:[#allocation3 + $0x154] sm:$0xf0]  ;;  %v2036_v41 = vld [vmem:[#allocation3 + $0x64] sm:$0xf] }
  0x47   :  { %603 = vst.msk [vmem:[#allocation2 + $0x160] sm:$0xff] %vm111_vm0, %v307_v13  ;;  %2111 = vmatpush.bf16.msra.mxu3 %v1787_v49  ;;  %v553_v30 = vsel %vm160_vm1, %v551_v40, %v552_v45  ;;  %v1783_v13 = vor.u32 %v2038_v48, %v1780_v57  ;;  %v587_v9 = vsel %vm274_vm2, %v585_v53, %v586_v12  ;;  %v2065_v1 = vld [vmem:[#allocation3 + $0x144] sm:$0xf0]  ;;  %v1946_v45 = vld [vmem:[#allocation3 + $0x1c0] sm:$0xf] }
  0x48   :  { %538 = vst.msk [vmem:[#allocation2 + $0x130] sm:$0xff] %vm111_vm0, %v89_v43  ;;  %v2216_v54 = vpack.i.bf16 %v553_v30, %v425_v56  ;;  %v1891_v39 = vor.u32 %v2067_v6, %v1890_v3  ;;  %v1883_v24 = vor.u32 %v2065_v1, %v1882_v62  ;;  %v314_v3 = vrot.slane %v2522_v38, 2  ;;  %v1938_v38 = vld [vmem:[#allocation3 + $0x1b0] sm:$0xf] }
  0x49   :  { %452 = vst.msk [vmem:[#allocation2 + $0x128] sm:$0xff] %vm111_vm0, %v425_v56  ;;  %2227 = vrot.lane.b32.xlu1 %v2226_v20, %s2275_s19  ;;  %v2081_v56 = vld [vmem:[#allocation3 + $0x1c4] sm:$0xf0] }
  0x4a   :  { %2217 = vrot.lane.b32.xlu2 %v2216_v54, %s2275_s19  ;;  %351 = vst.msk [vmem:[#allocation2 + $0x1e8] sm:$0xff] %vm111_vm0, %v313_v27  ;;  %1438 = vmatpush.bf16.msrb.mxu1 %v1783_v13  ;;  %v1947_v20 = vor.u32 %v2081_v56, %v1946_v45 }
  0x4b   :  { %1340 = vmatpush.bf16.msrb.mxu3 %v1971_v32  ;;  %1293 = vmatpush.bf16.msrb.mxu2 %v1891_v39  ;;  %602 = vst.msk [vmem:[#allocation2 + $0x138] sm:$0xff] %vm111_vm0, %v587_v9  ;;  %v1772_v32 = vld [vmem:[#allocation3 + $0x68] sm:$0xf0] }
  0x4c   :  { %605 = vst.msk [vmem:[#allocation2 + $0x1b0] sm:$0xff] %vm111_vm0, %v313_v27  ;;  %v1775_v51 = vor.u32 %v2036_v41, %v1772_v32 }
  0x4d   :  { %350 = vst.msk [vmem:[#allocation2 + $0x1c0] sm:$0xff] %vm111_vm0, %v2734_v2 }
  0x4e   :  { %1439 = vmatpush.bf16.msrb.mxu1 %v1775_v51  ;;  %604 = vst.msk [vmem:[#allocation2 + $0x188] sm:$0xff] %vm111_vm0, %v2734_v2  ;;  %v2034_v2 = vld [vmem:[#allocation3 + $0x54] sm:$0xf] }
  0x4f   :  { %1341 = vmatpush.bf16.msrb.mxu3 %v1963_v0  ;;  %1294 = vmatpush.bf16.msrb.mxu2 %v1883_v24  ;;  %v320_v24 = vrot.slane %v2531_v47, 2  ;;  %v318_v47 = vrot.slane %v104_v44, 2 }
  0x73   :  { %v2138_v59 = vpop.permute.xlu2 %2137 }
  0x74   :  { %v2140_v15 = vunpack.i.h.bf16 %v2138_v59  ;;  %v2139_v18 = vunpack.i.l.bf16 %v2138_v59 }
  0x76   :  { %269 = vst.msk [vmem:[#allocation2 + $0x1b8] sm:$0xff] %vm257_vm3, %v2140_v15 }
  0x77   :  { %578 = vst.msk [vmem:[#allocation2 + $0x180] sm:$0xff] %vm257_vm3, %v2140_v15  ;;  %v1954_v15 = vld [vmem:[#allocation3 + $0x1d0] sm:$0xf] }
  0x78   :  { %268 = vst.msk [vmem:[#allocation2 + $0x190] sm:$0xff] %vm257_vm3, %v2139_v18 }
  0x79   :  { %577 = vst.msk [vmem:[#allocation2 + $0x158] sm:$0xff] %vm257_vm3, %v2139_v18  ;;  %v2083_v18 = vld [vmem:[#allocation3 + $0x1d4] sm:$0xf0] }
  0x7a   :  { %v1955_v29 = vor.u32 %v2083_v18, %v1954_v15 }
  0x7b   :  { %v2722_v17 = vpop.permute.xlu2 %2142 }
  0x7c   :  { %v2144_v60 = vunpack.i.l.bf16 %v2722_v17  ;;  %v2145_v49 = vunpack.i.h.bf16 %v2722_v17  ;;  %1342 = vmatpush.bf16.msrb.mxu3 %v1955_v29 }
  0x7e   :  { %415 = vst.msk [vmem:[#allocation2 + $0x198] sm:$0xff] %vm257_vm3, %v2144_v60 }
  0x7f   :  { %416 = vst.msk [vmem:[#allocation2 + $0x1c0] sm:$0xff] %vm257_vm3, %v2145_v49  ;;  %v661_v39 = vld [vmem:[#allocation2 + $0x190] sm:$0xff]  ;;  %v666_v49 = vld [vmem:[#allocation2 + $0x1b8] sm:$0xff] }
  0x80   :  { %v2118_v34 = vpop.permute.xlu0 %2117  ;;  %1343 = vmatpush.bf16.msrb.mxu3 %v1947_v20  ;;  %v2795_v29 = vpack.c.bf16 %v666_v49, %v661_v39  ;;  %v2850_v39 = vld [vmem:[%s3308_s0 + $0x9c] sm:$0x1] }
  0x81   :  { %v2120_v61 = vunpack.i.h.bf16 %v2118_v34  ;;  %v2119_v63 = vunpack.i.l.bf16 %v2118_v34  ;;  %v1994_v34 = vld [vmem:[#allocation3 + $0x220] sm:$0xf] }
  0x82   :  { %v1995_v54 = vor.u32 %v2093_v11, %v1994_v34  ;;  %v1930_v34 = vld [vmem:[#allocation3 + $0x1a0] sm:$0xf]  ;;  %v2077_v11 = vld [vmem:[#allocation3 + $0x1a4] sm:$0xf0] }
  0x83   :  { %v2128_v8 = vpop.permute.xlu1 %2127  ;;  %267 = vst.msk [vmem:[#allocation2 + $0x168] sm:$0xff] %vm257_vm3, %v2120_v61  ;;  %v2754_v26 = vpop.permute.xlu2 %2157  ;;  %v1764_v61 = vld [vmem:[#allocation3 + $0x58] sm:$0xf0] }
  0x84   :  { %v2130_v58 = vunpack.i.h.bf16 %v2128_v8  ;;  %v2129_v14 = vunpack.i.l.bf16 %v2128_v8  ;;  %266 = vst.msk [vmem:[#allocation2 + $0x140] sm:$0xff] %vm257_vm3, %v2119_v63  ;;  %v2160_v21 = vunpack.i.h.bf16 %v2754_v26  ;;  %v2159_v60 = vunpack.i.l.bf16 %v2754_v26  ;;  %v1874_v8 = vld [vmem:[#allocation3 + $0x130] sm:$0xf]  ;;  %1394 = vmatpush.bf16.msrb.mxu0 %v1995_v54 }
  0x85   :  { %v1767_v7 = vor.u32 %v2034_v2, %v1764_v61  ;;  %v662_v33 = vld [vmem:[#allocation2 + $0x198] sm:$0xff]  ;;  %v1986_v54 = vld [vmem:[#allocation3 + $0x210] sm:$0xf] }
  0x86   :  { %259 = vst.msk [vmem:[#allocation2 + $0x28] sm:$0xff] %vm257_vm3, %v2130_v58  ;;  %v1875_v58 = vor.u32 %v2063_v10, %v1874_v8  ;;  %v2091_v2 = vld [vmem:[#allocation3 + $0x214] sm:$0xf0]  ;;  %v2030_v8 = vld [vmem:[#allocation3 + $0x34] sm:$0xf] }
  0x87   :  { %258 = vst.msk [vmem:[#allocation2] sm:$0xff] %vm257_vm3, %v2129_v14  ;;  %v315_v14 = vrot.slane %v102_v35, 2  ;;  %1440 = vmatpush.bf16.msrb.mxu1 %v1767_v7  ;;  %v1987_v7 = vor.u32 %v2091_v2, %v1986_v54  ;;  %v1748_v10 = vld [vmem:[#allocation3 + $0x38] sm:$0xf0]  ;;  %v2073_v54 = vld [vmem:[#allocation3 + $0x184] sm:$0xf0] }
  0x88   :  { %v2123_v59 = vpop.permute.xlu0 %2122  ;;  %271 = vst.msk [vmem:[#allocation2 + $0x208] sm:$0xff] %vm257_vm3, %v2160_v21  ;;  %1295 = vmatpush.bf16.msrb.mxu2 %v1875_v58  ;;  %v2059_v58 = vld [vmem:[#allocation3 + $0x114] sm:$0xf0] }
  0x89   :  { %v2125_v25 = vunpack.i.h.bf16 %v2123_v59  ;;  %v2124_v19 = vunpack.i.l.bf16 %v2123_v59  ;;  %580 = vst.msk [vmem:[#allocation2 + $0x1d0] sm:$0xff] %vm257_vm3, %v2160_v21  ;;  %v2079_v59 = vld [vmem:[#allocation3 + $0x1b4] sm:$0xf0]  ;;  %v2793_v15 = vsel %vm274_vm2, %v314_v3, %v315_v14  ;;  %v464_v21 = vrot.slane %v2592_v5, 2  ;;  %1395 = vmatpush.bf16.msrb.mxu0 %v1987_v7  ;;  %v1732_v7 = vld [vmem:[#allocation3 + $0x18] sm:$0xf0] }
  0x8a   :  { %v656_v46 = vld [vmem:[#allocation2 + $0x168] sm:$0xff]  ;;  %270 = vst.msk [vmem:[#allocation2 + $0x1e0] sm:$0xff] %vm257_vm3, %v2159_v60  ;;  %v1939_v18 = vor.u32 %v2079_v59, %v1938_v38 }
  0x8b   :  { %v2133_v37 = vpop.permute.xlu1 %2132  ;;  %413 = vst.msk [vmem:[#allocation2 + $0x148] sm:$0xff] %vm257_vm3, %v2124_v19  ;;  %v651_v52 = vld [vmem:[#allocation2 + $0x140] sm:$0xff]  ;;  %v2173_v4 = vpop.permute.xlu2 %2172  ;;  %v1756_v19 = vld [vmem:[#allocation3 + $0x48] sm:$0xf0] }
  0x8c   :  { %v2135_v36 = vunpack.i.h.bf16 %v2133_v37  ;;  %v2134_v43 = vunpack.i.l.bf16 %v2133_v37  ;;  %v2758_v16 = vpack.c.bf16 %v656_v46, %v651_v52  ;;  %414 = vst.msk [vmem:[#allocation2 + $0x170] sm:$0xff] %vm257_vm3, %v2125_v25  ;;  %v2174_v9 = vunpack.i.l.bf16 %v2173_v4  ;;  %v2032_v25 = vld [vmem:[#allocation3 + $0x44] sm:$0xf]  ;;  %v1866_v37 = vld [vmem:[#allocation3 + $0x120] sm:$0xf]  ;;  %1344 = vmatpush.bf16.msrb.mxu3 %v1939_v18 }
  0x8d   :  { %v616_v17 = vld [vmem:[#allocation2 + $0x28] sm:$0xff]  ;;  %v2175_v23 = vunpack.i.h.bf16 %v2173_v4  ;;  %579 = vst.msk [vmem:[#allocation2 + $0x1a8] sm:$0xff] %vm257_vm3, %v2159_v60  ;;  %v1759_v32 = vor.u32 %v2032_v25, %v1756_v19  ;;  %v317_v4 = vrot.slane %v2524_v42, 2 }
  0x8e   :  { %406 = vst.msk [vmem:[#allocation2 + $0x30] sm:$0xff] %vm257_vm3, %v2135_v36  ;;  %v611_v22 = vld [vmem:[#allocation2] sm:$0xff]  ;;  %1221 = vmatmul.bf16.vlgmr.msra.gmra.mxu2 %v2758_v16  ;;  %v2061_v46 = vld [vmem:[#allocation3 + $0x124] sm:$0xf0]  ;;  %v68_v36 = vld [vmem:[%s3308_s0 + $0x94] sm:$0x1] }
  0x8f   :  { %405 = vst.msk [vmem:[#allocation2 + $0x8] sm:$0xff] %vm257_vm3, %v2134_v43  ;;  %v2764_v28 = vpack.c.bf16 %v616_v17, %v611_v22  ;;  %v1867_v1 = vor.u32 %v2061_v46, %v1866_v37  ;;  %1441 = vmatpush.bf16.msrb.mxu1 %v1759_v32  ;;  %v108_v52 = vunpack.c.l.bf16 %v68_v36  ;;  %v321_v17 = vrot.slane %v106_v50, 2  ;;  %v667_v50 = vld [vmem:[#allocation2 + $0x1c0] sm:$0xff]  ;;  %v676_v19 = vld [vmem:[#allocation2 + $0x208] sm:$0xff]  ;;  %v1922_v32 = vld [vmem:[#allocation3 + $0x190] sm:$0xf] }
  0x90   :  { %v2148_v40 = vpop.permute.xlu0 %2147  ;;  %409 = vst.msk [vmem:[#allocation2 + $0xa8] sm:$0xff] %vm257_vm3, %v2174_v9  ;;  %v69_v9 = vld [vmem:[%s3308_s0 + $0x98] sm:$0xf]  ;;  %v319_v18 = vsel %vm274_vm2, %v317_v4, %v318_v47  ;;  %v2026_v4 = vld [vmem:[#allocation3 + $0x14] sm:$0xf] }
  0x91   :  { %1201 = vmatmul.bf16.vlgmr.msra.gmra.mxu0 %v2764_v28  ;;  %v2150_v27 = vunpack.i.h.bf16 %v2148_v40  ;;  %v2149_v30 = vunpack.i.l.bf16 %v2148_v40  ;;  %410 = vst.msk [vmem:[#allocation2 + $0xd0] sm:$0xff] %vm257_vm3, %v2175_v23  ;;  %1296 = vmatpush.bf16.msrb.mxu2 %v1867_v1  ;;  %v465_v45 = vrot.slane %v108_v52, 2  ;;  %v2853_v49 = vunpack.c.l.bf16 %v69_v9  ;;  %v671_v25 = vld [vmem:[#allocation2 + $0x1e0] sm:$0xff]  ;;  %v2075_v37 = vld [vmem:[#allocation3 + $0x194] sm:$0xf0] }
  0x92   :  { %v652_v55 = vld [vmem:[#allocation2 + $0x148] sm:$0xff]  ;;  %352 = vst.msk [vmem:[#allocation2 + $0x210] sm:$0xff] %vm111_vm0, %v2793_v15  ;;  %v110_v23 = vunpack.c.l.bf16 %v2850_v39  ;;  %v427_v38 = vrot.slane %v108_v52, 1  ;;  %v2028_v52 = vld [vmem:[#allocation3 + $0x24] sm:$0xf] }
  0x93   :  { %v2153_v53 = vpop.permute.xlu1 %2152  ;;  %261 = vst.msk [vmem:[#allocation2 + $0x78] sm:$0xff] %vm257_vm3, %v2150_v27  ;;  %v657_v63 = vld [vmem:[#allocation2 + $0x170] sm:$0xff]  ;;  %v2188_v60 = vpop.permute.xlu2 %2187  ;;  %v2826_v31 = vsel %vm274_vm2, %v464_v21, %v465_v45  ;;  %v1740_v21 = vld [vmem:[#allocation3 + $0x28] sm:$0xf0]  ;;  %v2057_v45 = vld [vmem:[#allocation3 + $0x104] sm:$0xf0] }
  0x94   :  { %v2155_v0 = vunpack.i.h.bf16 %v2153_v53  ;;  %570 = vst.msk [vmem:[#allocation2 + $0x40] sm:$0xff] %vm257_vm3, %v2150_v27  ;;  %v2776_v48 = vpack.c.bf16 %v657_v63, %v652_v55  ;;  %v2154_v57 = vunpack.i.l.bf16 %v2153_v53  ;;  %v2823_v55 = vsel %vm274_vm2, %v320_v24, %v321_v17  ;;  %v2054_v9 = vld [vmem:[#allocation3 + $0xf4] sm:$0xf] }
  0x95   :  { %v617_v12 = vld [vmem:[#allocation2 + $0x30] sm:$0xff]  ;;  %260 = vst.msk [vmem:[#allocation2 + $0x50] sm:$0xff] %vm257_vm3, %v2149_v30  ;;  %v1931_v53 = vor.u32 %v2077_v11, %v1930_v34  ;;  %v2236_v61 = vpack.i.bf16 %v2826_v31, %v2823_v55  ;;  %v2832_v63 = vpack.c.bf16 %v667_v50, %v662_v33  ;;  %v2873_v24 = vpack.c.bf16 %v676_v19, %v671_v25 }
  0x96   :  { %v612_v13 = vld [vmem:[#allocation2 + $0x8] sm:$0xff]  ;;  %569 = vst.msk [vmem:[#allocation2 + $0x18] sm:$0xff] %vm257_vm3, %v2149_v30  ;;  %1270 = vmatmul.bf16.vlgmr.msra.gmra.mxu3 %v2776_v48  ;;  %v2190_v30 = vunpack.i.h.bf16 %v2188_v60  ;;  %v1743_v50 = vor.u32 %v2028_v52, %v1740_v21  ;;  %v1972_v52 = vld [vmem:[#allocation3 + $0x1f8] sm:$0xf0] }
  0x97   :  { %v2783_v6 = vpack.c.bf16 %v617_v12, %v612_v13  ;;  %408 = vst.msk [vmem:[#allocation2 + $0x80] sm:$0xff] %vm257_vm3, %v2155_v0  ;;  %v2189_v0 = vunpack.i.l.bf16 %v2188_v60  ;;  %1345 = vmatpush.bf16.msrb.mxu3 %v1931_v53  ;;  %2237 = vrot.lane.b32.xlu0 %v2236_v61, %s2275_s19  ;;  %v1751_v12 = vor.u32 %v2030_v8, %v1748_v10  ;;  %v1914_v53 = vld [vmem:[#allocation3 + $0x180] sm:$0xf]  ;;  %v632_v2 = vld [vmem:[#allocation2 + $0xa8] sm:$0xff]  ;;  %v589_v10 = vrot.slane %v110_v23, 2 }
  0x98   :  { %407 = vst.msk [vmem:[#allocation2 + $0x58] sm:$0xff] %vm257_vm3, %v2154_v57  ;;  %v2789_v35 = vpop.permute.xlu0 %2162  ;;  %v1858_v57 = vld [vmem:[#allocation3 + $0x110] sm:$0xf] }
  0x99   :  { %1250 = vmatmul.bf16.vlgmr.msra.gmra.mxu1 %v2783_v6  ;;  %v2165_v40 = vunpack.i.h.bf16 %v2789_v35  ;;  %v2164_v56 = vunpack.i.l.bf16 %v2789_v35  ;;  %606 = vst.msk [vmem:[#allocation2 + $0x1d8] sm:$0xff] %vm111_vm0, %v2793_v15  ;;  %v1859_v42 = vor.u32 %v2059_v58, %v1858_v57  ;;  %v426_v35 = vrot.slane %v2592_v5, 1  ;;  %v2024_v57 = vld [vmem:[#allocation3 + $0x4] sm:$0xf]  ;;  %v1724_v58 = vld [vmem:[#allocation3 + $0x8] sm:$0xf0] }
  0x9a   :  { %v626_v26 = vld [vmem:[#allocation2 + $0x78] sm:$0xff]  ;;  %265 = vst.msk [vmem:[#allocation2 + $0x118] sm:$0xff] %vm257_vm3, %v2190_v30  ;;  %1442 = vmatpush.bf16.msrb.mxu1 %v1751_v12  ;;  %v1735_v12 = vor.u32 %v2026_v4, %v1732_v7  ;;  %v1727_v39 = vor.u32 %v2024_v57, %v1724_v58  ;;  %v2050_v57 = vld [vmem:[#allocation3 + $0xd4] sm:$0xf] }
  0x9b   :  { %v2168_v41 = vpop.permute.xlu1 %2167  ;;  %418 = vst.msk [vmem:[#allocation2 + $0x210] sm:$0xff] %vm257_vm3, %v2165_v40  ;;  %1297 = vmatpush.bf16.msrb.mxu2 %v1859_v42  ;;  %v2867_v46 = vsel %vm160_vm1, %v426_v35, %v427_v38  ;;  %v1850_v40 = vld [vmem:[#allocation3 + $0x100] sm:$0xf]  ;;  %v1844_v35 = vld [vmem:[#allocation3 + $0xf8] sm:$0xf0] }
  0x9c   :  { %v2170_v51 = vunpack.i.h.bf16 %v2168_v41  ;;  %v2169_v62 = vunpack.i.l.bf16 %v2168_v41  ;;  %v621_v43 = vld [vmem:[#allocation2 + $0x50] sm:$0xff]  ;;  %417 = vst.msk [vmem:[#allocation2 + $0x1e8] sm:$0xff] %vm257_vm3, %v2164_v56  ;;  %v554_v41 = vrot.slane %v2853_v49, 1  ;;  %v1851_v56 = vor.u32 %v2057_v45, %v1850_v40  ;;  %v2004_v40 = vld [vmem:[#allocation3 + $0x238] sm:$0xf0] }
  0x9d   :  { %v2808_v22 = vpack.c.bf16 %v626_v26, %v621_v43  ;;  %574 = vst.msk [vmem:[#allocation2 + $0xe0] sm:$0xff] %vm257_vm3, %v2190_v30  ;;  %v2231_v26 = vpack.i.bf16 %v319_v18, %v2793_v15  ;;  %v1923_v43 = vor.u32 %v2075_v37, %v1922_v32  ;;  %v2089_v30 = vld [vmem:[#allocation3 + $0x204] sm:$0xf0]  ;;  %v614_v58 = vld [vmem:[#allocation2 + $0x18] sm:$0xff] }
  0x9e   :  { %263 = vst.msk [vmem:[#allocation2 + $0xc8] sm:$0xff] %vm257_vm3, %v2170_v51  ;;  %1226 = vmatmul.bf16.gmra.mxu2 %v2795_v29  ;;  %v627_v27 = vld [vmem:[#allocation2 + $0x80] sm:$0xff]  ;;  %1443 = vmatpush.bf16.msrb.mxu1 %v1743_v50 }
  0x9f   :  { %572 = vst.msk [vmem:[#allocation2 + $0x90] sm:$0xff] %vm257_vm3, %v2170_v51  ;;  %v622_v44 = vld [vmem:[#allocation2 + $0x58] sm:$0xff]  ;;  %v555_v51 = vrot.slane %v110_v23, 1  ;;  %2232 = vrot.lane.b32.xlu2 %v2231_v26, %s2275_s19  ;;  %1346 = vmatpush.bf16.msrb.mxu3 %v1923_v43  ;;  %v1847_v23 = vor.u32 %v2054_v9, %v1844_v35  ;;  %v2086_v43 = vld [vmem:[#allocation3 + $0x1f4] sm:$0xf] }
  0xa0   :  { %262 = vst.msk [vmem:[#allocation2 + $0xa0] sm:$0xff] %vm257_vm3, %v2169_v62  ;;  %v2820_v20 = vpop.permute.xlu0 %2177  ;;  %v2838_v14 = vpack.c.bf16 %v627_v27, %v622_v44  ;;  %v1978_v27 = vld [vmem:[#allocation3 + $0x200] sm:$0xf]  ;;  %v588_v44 = vrot.slane %v2853_v49, 2  ;;  %1298 = vmatpush.bf16.msrb.mxu2 %v1851_v56  ;;  %v2052_v50 = vld [vmem:[#allocation3 + $0xe4] sm:$0xf] }
  0xa1   :  { %1206 = vmatmul.bf16.gmra.mxu0 %v2808_v22  ;;  %571 = vst.msk [vmem:[#allocation2 + $0x68] sm:$0xff] %vm257_vm3, %v2169_v62  ;;  %v2180_v13 = vunpack.i.h.bf16 %v2820_v20  ;;  %v2179_v59 = vunpack.i.l.bf16 %v2820_v20  ;;  %v556_v17 = vsel %vm160_vm1, %v554_v41, %v555_v51  ;;  %v1979_v34 = vor.u32 %v2089_v30, %v1978_v27  ;;  %v2070_v41 = vld [vmem:[#allocation3 + $0x174] sm:$0xf]  ;;  %v646_v37 = vld [vmem:[#allocation2 + $0x118] sm:$0xff]  ;;  %v1836_v30 = vld [vmem:[#allocation3 + $0xe8] sm:$0xf0] }
  0xa2   :  { %264 = vst.msk [vmem:[#allocation2 + $0xf0] sm:$0xff] %vm257_vm3, %v2189_v0  ;;  %v2241_v60 = vpack.i.bf16 %v556_v17, %v2867_v46  ;;  %v677_v20 = vld [vmem:[#allocation2 + $0x210] sm:$0xff]  ;;  %1444 = vmatpush.bf16.msrb.mxu1 %v1735_v12 }
  0xa3   :  { %v2842_v3 = vpop.permute.xlu1 %2182  ;;  %573 = vst.msk [vmem:[#allocation2 + $0xb8] sm:$0xff] %vm257_vm3, %v2189_v0  ;;  %v672_v61 = vld [vmem:[#allocation2 + $0x1e8] sm:$0xff]  ;;  %1396 = vmatpush.bf16.msrb.mxu0 %v1979_v34  ;;  %v1915_v0 = vor.u32 %v2073_v54, %v1914_v53  ;;  %v2068_v53 = vld [vmem:[#allocation3 + $0x164] sm:$0xf] }
  0xa4   :  { %273 = vst.msk [vmem:[#allocation2 + $0x258] sm:$0xff] %vm257_vm3, %v2180_v13  ;;  %v2184_v33 = vunpack.i.l.bf16 %v2842_v3  ;;  %2242 = vrot.lane.b32.xlu1 %v2241_v60, %s2275_s19  ;;  %v2185_v8 = vunpack.i.h.bf16 %v2842_v3  ;;  %v2896_v38 = vpack.c.bf16 %v677_v20, %v672_v61  ;;  %1487 = vmatpush.bf16.msra.mxu2 %v1847_v23  ;;  %v1975_v60 = vor.u32 %v2086_v43, %v1972_v52  ;;  %v1900_v54 = vld [vmem:[#allocation3 + $0x168] sm:$0xf0]  ;;  %v1956_v43 = vld [vmem:[#allocation3 + $0x1d8] sm:$0xf0] }
  0xa5   :  { %v636_v1 = vld [vmem:[#allocation2 + $0xc8] sm:$0xff]  ;;  %582 = vst.msk [vmem:[#allocation2 + $0x220] sm:$0xff] %vm257_vm3, %v2180_v13  ;;  %v637_v13 = vld [vmem:[#allocation2 + $0xd0] sm:$0xff]  ;;  %1347 = vmatpush.bf16.msrb.mxu3 %v1915_v0  ;;  %v1839_v20 = vor.u32 %v2052_v50, %v1836_v30  ;;  %v1903_v0 = vor.u32 %v2068_v53, %v1900_v54  ;;  %v635_v54 = vld [vmem:[#allocation2 + $0xc0] sm:$0xff] }
  0xa6   :  { %1275 = vmatmul.bf16.gmra.mxu3 %v2832_v63  ;;  %272 = vst.msk [vmem:[#allocation2 + $0x230] sm:$0xff] %vm257_vm3, %v2179_v59  ;;  %1445 = vmatpush.bf16.msrb.mxu1 %v1727_v39  ;;  %v620_v61 = vld [vmem:[#allocation2 + $0x48] sm:$0xff] }
  0xa7   :  { %v631_v62 = vld [vmem:[#allocation2 + $0xa0] sm:$0xff]  ;;  %581 = vst.msk [vmem:[#allocation2 + $0x1f8] sm:$0xff] %vm257_vm3, %v2179_v59  ;;  %v2203_v59 = vpop.permute.xlu2 %2202  ;;  %1585 = vmatpush.bf16.msra.mxu0 %v1975_v60  ;;  %v1884_v53 = vld [vmem:[#allocation3 + $0x148] sm:$0xf0] }
  0xa8   :  { %v2193_v5 = vpop.permute.xlu0 %2192  ;;  %v2879_v47 = vpack.c.bf16 %v636_v1, %v631_v62  ;;  %353 = vst.msk [vmem:[#allocation2 + $0x238] sm:$0xff] %vm111_vm0, %v319_v18  ;;  %v2205_v25 = vunpack.i.h.bf16 %v2203_v59  ;;  %1488 = vmatpush.bf16.msra.mxu2 %v1839_v20 }
  0xa9   :  { %1255 = vmatmul.bf16.gmra.mxu1 %v2838_v14  ;;  %v2195_v15 = vunpack.i.h.bf16 %v2193_v5  ;;  %v2194_v36 = vunpack.i.l.bf16 %v2193_v5  ;;  %607 = vst.msk [vmem:[#allocation2 + $0x200] sm:$0xff] %vm111_vm0, %v319_v18  ;;  %v2902_v18 = vpack.c.bf16 %v637_v13, %v632_v2  ;;  %v1908_v5 = vld [vmem:[#allocation3 + $0x178] sm:$0xf0]  ;;  %v641_v32 = vld [vmem:[#allocation2 + $0xf0] sm:$0xff]  ;;  %v615_v2 = vld [vmem:[#allocation2 + $0x20] sm:$0xff] }
  0xaa   :  { %419 = vst.msk [vmem:[#allocation2 + $0x238] sm:$0xff] %vm257_vm3, %v2184_v33  ;;  %v1911_v51 = vor.u32 %v2070_v41, %v1908_v5  ;;  %v2919_v1 = vpack.c.bf16 %v646_v37, %v641_v32  ;;  %v2933_v7 = vpack.c.bf16 %v620_v61, %v615_v2  ;;  %v619_v13 = vld [vmem:[#allocation2 + $0x40] sm:$0xff]  ;;  %v640_v2 = vld [vmem:[#allocation2 + $0xe8] sm:$0xff] }
  0xab   :  { %412 = vst.msk [vmem:[#allocation2 + $0x120] sm:$0xff] %vm257_vm3, %v2195_v15  ;;  %v2198_v11 = vpop.permute.xlu1 %2197  ;;  %v686_v26 = vld [vmem:[#allocation2 + $0x258] sm:$0xff]  ;;  %v2939_v23 = vpack.c.bf16 %v619_v13, %v614_v58  ;;  %v639_v58 = vld [vmem:[#allocation2 + $0xe0] sm:$0xff] }
  0xac   :  { %411 = vst.msk [vmem:[#allocation2 + $0xf8] sm:$0xff] %vm257_vm3, %v2194_v36  ;;  %v2200_v42 = vunpack.i.h.bf16 %v2198_v11  ;;  %v2199_v3 = vunpack.i.l.bf16 %v2198_v11  ;;  %1536 = vmatpush.bf16.msra.mxu3 %v1911_v51 }
  0xad   :  { %609 = vst.msk [vmem:[#allocation2 + $0x250] sm:$0xff] %vm111_vm0, %v2826_v31  ;;  %v590_v31 = vsel %vm274_vm2, %v588_v44, %v589_v10  ;;  %v681_v19 = vld [vmem:[#allocation2 + $0x230] sm:$0xff]  ;;  %v1964_v10 = vld [vmem:[#allocation3 + $0x1e8] sm:$0xf0] }
  0xae   :  { %1231 = vmatmul.bf16.gmra.mxu2 %v2873_v24  ;;  %354 = vst.msk [vmem:[#allocation2 + $0x260] sm:$0xff] %vm111_vm0, %v2823_v55  ;;  %v2915_v62 = vpack.c.bf16 %v686_v26, %v681_v19  ;;  %v1892_v19 = vld [vmem:[#allocation3 + $0x158] sm:$0xf0]  ;;  %v625_v26 = vld [vmem:[#allocation2 + $0x70] sm:$0xff] }
  0xaf   :  { %608 = vst.msk [vmem:[#allocation2 + $0x228] sm:$0xff] %vm111_vm0, %v2823_v55  ;;  %v2204_v55 = vunpack.i.l.bf16 %v2203_v59  ;;  %v2218_v37 = vpop.permute.xlu2 %2217 }
  0xb0   :  { %420 = vst.msk [vmem:[#allocation2 + $0x260] sm:$0xff] %vm257_vm3, %v2185_v8  ;;  %v2208_v17 = vpop.permute.xlu0 %2207  ;;  %1537 = vmatpush.bf16.msra.mxu3 %v1903_v0  ;;  %v2084_v8 = vld [vmem:[#allocation3 + $0x1e4] sm:$0xf]  ;;  %v2220_v51 = vunpack.i.h.bf16 %v2218_v37 }
  0xb1   :  { %1211 = vmatmul.bf16.gmra.mxu0 %v2879_v47  ;;  %516 = vst.msk [vmem:[#allocation2 + $0x38] sm:$0xff] %vm257_vm3, %v2200_v42  ;;  %v682_v15 = vld [vmem:[#allocation2 + $0x238] sm:$0xff]  ;;  %v2210_v45 = vunpack.i.h.bf16 %v2208_v17  ;;  %v2209_v33 = vunpack.i.l.bf16 %v2208_v17  ;;  %v1967_v42 = vor.u32 %v2084_v8, %v1964_v10  ;;  %v1996_v17 = vld [vmem:[#allocation3 + $0x228] sm:$0xf0]  ;;  %v2961_v8 = vpack.c.bf16 %v640_v2, %v635_v54  ;;  %v2080_v10 = vld [vmem:[#allocation3 + $0x1c4] sm:$0xf] }
  0xb2   :  { %515 = vst.msk [vmem:[#allocation2 + $0x10] sm:$0xff] %vm257_vm3, %v2199_v3  ;;  %v1828_v3 = vld [vmem:[#allocation3 + $0xd8] sm:$0xf0]  ;;  %v655_v54 = vld [vmem:[#allocation2 + $0x160] sm:$0xff]  ;;  %v660_v2 = vld [vmem:[#allocation2 + $0x188] sm:$0xff] }
  0xb3   :  { %610 = vst.msk [vmem:[#allocation2 + $0x278] sm:$0xff] %vm111_vm0, %v590_v31  ;;  %v642_v21 = vld [vmem:[#allocation2 + $0xf8] sm:$0xff]  ;;  %v2213_v12 = vpop.permute.xlu1 %2212  ;;  %v1831_v39 = vor.u32 %v2050_v57, %v1828_v3  ;;  %1586 = vmatpush.bf16.msra.mxu0 %v1967_v42  ;;  %v2046_v3 = vld [vmem:[#allocation3 + $0xb4] sm:$0xf] }
  0xb4   :  { %460 = vst.msk [vmem:[#allocation2 + $0x268] sm:$0xff] %vm111_vm0, %v2867_v46  ;;  %v647_v46 = vld [vmem:[#allocation2 + $0x120] sm:$0xff]  ;;  %v2215_v9 = vunpack.i.h.bf16 %v2213_v12  ;;  %v2214_v35 = vunpack.i.l.bf16 %v2213_v12  ;;  %v1948_v12 = vld [vmem:[#allocation3 + $0x1c8] sm:$0xf0]  ;;  %v634_v57 = vld [vmem:[#allocation2 + $0xb8] sm:$0xff] }
  0xb5   :  { %546 = vst.msk [vmem:[#allocation2 + $0x270] sm:$0xff] %vm111_vm0, %v2853_v49  ;;  %v2094_v49 = vld [vmem:[#allocation3 + $0x234] sm:$0xf]  ;;  %v2926_v34 = vpack.c.bf16 %v647_v46, %v642_v21  ;;  %1489 = vmatpush.bf16.msra.mxu2 %v1831_v39  ;;  %v2219_v46 = vunpack.i.l.bf16 %v2218_v37  ;;  %v2048_v21 = vld [vmem:[#allocation3 + $0xc4] sm:$0xf]  ;;  %v2966_v42 = vpack.c.bf16 %v639_v58, %v634_v57  ;;  %v2992_v57 = vpack.c.bf16 %v660_v2, %v655_v54 }
  0xb6   :  { %1280 = vmatmul.bf16.gmra.mxu3 %v2896_v38  ;;  %518 = vst.msk [vmem:[#allocation2 + $0x88] sm:$0xff] %vm257_vm3, %v2205_v25  ;;  %v2007_v27 = vor.u32 %v2094_v49, %v2004_v40  ;;  %v2066_v25 = vld [vmem:[#allocation3 + $0x154] sm:$0xf]  ;;  %v2092_v49 = vld [vmem:[#allocation3 + $0x224] sm:$0xf] }
  0xb7   :  { %517 = vst.msk [vmem:[#allocation2 + $0x60] sm:$0xff] %vm257_vm3, %v2204_v55  ;;  %v687_v36 = vld [vmem:[#allocation2 + $0x260] sm:$0xff]  ;;  %v630_v55 = vld [vmem:[#allocation2 + $0x98] sm:$0xff]  ;;  %v1895_v41 = vor.u32 %v2066_v25, %v1892_v19  ;;  %v1999_v60 = vor.u32 %v2092_v49, %v1996_v17  ;;  %v1820_v40 = vld [vmem:[#allocation3 + $0xc8] sm:$0xf0] }
  0xb8   :  { %v2923_v56 = vpack.c.bf16 %v687_v36, %v682_v15  ;;  %520 = vst.msk [vmem:[#allocation2 + $0xd8] sm:$0xff] %vm257_vm3, %v2210_v45  ;;  %1638 = vmatpush.bf16.msra.mxu1 %v2007_v27  ;;  %v618_v44 = vld [vmem:[#allocation2 + $0x38] sm:$0xff]  ;;  %v2946_v32 = vpack.c.bf16 %v630_v55, %v625_v26  ;;  %v629_v15 = vld [vmem:[#allocation2 + $0x90] sm:$0xff]  ;;  %v2223_v45 = vpop.permute.xlu0 %2222 }
  0xb9   :  { %1260 = vmatmul.bf16.gmra.mxu1 %v2902_v18  ;;  %519 = vst.msk [vmem:[#allocation2 + $0xb0] sm:$0xff] %vm257_vm3, %v2209_v33  ;;  %v613_v11 = vld [vmem:[#allocation2 + $0x10] sm:$0xff]  ;;  %1538 = vmatpush.bf16.msra.mxu3 %v1895_v41  ;;  %v1823_v33 = vor.u32 %v2048_v21, %v1820_v40  ;;  %v2225_v27 = vunpack.i.h.bf16 %v2223_v45  ;;  %v2224_v30 = vunpack.i.l.bf16 %v2223_v45  ;;  %v1812_v39 = vld [vmem:[#allocation3 + $0xb8] sm:$0xf0] }
  0xba   :  { %v2931_v4 = vpack.c.bf16 %v618_v44, %v613_v11  ;;  %522 = vst.msk [vmem:[#allocation2 + $0x128] sm:$0xff] %vm257_vm3, %v2215_v9  ;;  %v2082_v36 = vld [vmem:[#allocation3 + $0x1d4] sm:$0xf]  ;;  %v2064_v44 = vld [vmem:[#allocation3 + $0x144] sm:$0xf]  ;;  %v1815_v25 = vor.u32 %v2046_v3, %v1812_v39  ;;  %v650_v41 = vld [vmem:[#allocation2 + $0x138] sm:$0xff] }
  0xbb   :  { %521 = vst.msk [vmem:[#allocation2 + $0x100] sm:$0xff] %vm257_vm3, %v2214_v35  ;;  %v1959_v52 = vor.u32 %v2082_v36, %v1956_v43  ;;  %1490 = vmatpush.bf16.msra.mxu2 %v1823_v33  ;;  %v1887_v61 = vor.u32 %v2064_v44, %v1884_v53  ;;  %v2228_v13 = vpop.permute.xlu1 %2227  ;;  %v2062_v19 = vld [vmem:[#allocation3 + $0x134] sm:$0xf]  ;;  %v1876_v26 = vld [vmem:[#allocation3 + $0x138] sm:$0xf0]  ;;  %v659_v3 = vld [vmem:[#allocation2 + $0x180] sm:$0xff] }
  0xbc   :  { %576 = vst.msk [vmem:[#allocation2 + $0x130] sm:$0xff] %vm257_vm3, %v2220_v51  ;;  %1639 = vmatpush.bf16.msra.mxu1 %v1999_v60  ;;  %v2230_v9 = vunpack.i.h.bf16 %v2228_v13  ;;  %v2229_v35 = vunpack.i.l.bf16 %v2228_v13  ;;  %v645_v55 = vld [vmem:[#allocation2 + $0x110] sm:$0xff]  ;;  %v1879_v37 = vor.u32 %v2062_v19, %v1876_v26  ;;  %v1988_v49 = vld [vmem:[#allocation3 + $0x218] sm:$0xf0]  ;;  %v2044_v33 = vld [vmem:[#allocation3 + $0xa4] sm:$0xf] }
  0xbd   :  { %v628_v31 = vld [vmem:[#allocation2 + $0x88] sm:$0xff]  ;;  %575 = vst.msk [vmem:[#allocation2 + $0x108] sm:$0xff] %vm257_vm3, %v2219_v46  ;;  %1587 = vmatpush.bf16.msra.mxu0 %v1959_v52  ;;  %1539 = vmatpush.bf16.msra.mxu3 %v1887_v61  ;;  %v2974_v46 = vpack.c.bf16 %v650_v41, %v645_v55  ;;  %v2078_v36 = vld [vmem:[#allocation3 + $0x1b4] sm:$0xf]  ;;  %v2060_v44 = vld [vmem:[#allocation3 + $0x124] sm:$0xf] }
  0xbe   :  { %1236 = vmatmul.bf16.gmra.mxu2 %v2915_v62  ;;  %v623_v59 = vld [vmem:[#allocation2 + $0x60] sm:$0xff]  ;;  %524 = vst.msk [vmem:[#allocation2 + $0x178] sm:$0xff] %vm257_vm3, %v2225_v27  ;;  %v2090_v43 = vld [vmem:[#allocation3 + $0x214] sm:$0xf]  ;;  %v1804_v27 = vld [vmem:[#allocation3 + $0xa8] sm:$0xf0] }
  0xbf   :  { %v2944_v5 = vpack.c.bf16 %v628_v31, %v623_v59  ;;  %v638_v11 = vld [vmem:[#allocation2 + $0xd8] sm:$0xff]  ;;  %523 = vst.msk [vmem:[#allocation2 + $0x150] sm:$0xff] %vm257_vm3, %v2224_v30  ;;  %1491 = vmatpush.bf16.msra.mxu2 %v1815_v25  ;;  %v1991_v21 = vor.u32 %v2090_v43, %v1988_v49  ;;  %v1868_v53 = vld [vmem:[#allocation3 + $0x128] sm:$0xf0]  ;;  %v2058_v49 = vld [vmem:[#allocation3 + $0x114] sm:$0xf] }
  0xc0   :  { %v633_v20 = vld [vmem:[#allocation2 + $0xb0] sm:$0xff]  ;;  %526 = vst.msk [vmem:[#allocation2 + $0x1c8] sm:$0xff] %vm257_vm3, %v2230_v9  ;;  %v1871_v61 = vor.u32 %v2060_v44, %v1868_v53  ;;  %v1932_v13 = vld [vmem:[#allocation3 + $0x1a8] sm:$0xf0] }
  0xc1   :  { %1216 = vmatmul.bf16.gmra.mxu0 %v2919_v1  ;;  %v2959_v0 = vpack.c.bf16 %v638_v11, %v633_v20  ;;  %v648_v31 = vld [vmem:[#allocation2 + $0x128] sm:$0xff]  ;;  %525 = vst.msk [vmem:[#allocation2 + $0x1a0] sm:$0xff] %vm257_vm3, %v2229_v35  ;;  %1540 = vmatpush.bf16.msra.mxu3 %v1879_v37  ;;  %v1807_v11 = vor.u32 %v2044_v33, %v1804_v27  ;;  %v654_v35 = vld [vmem:[#allocation2 + $0x158] sm:$0xff]  ;;  %v2042_v37 = vld [vmem:[#allocation3 + $0x94] sm:$0xf] }
  0xc2   :  { %v643_v59 = vld [vmem:[#allocation2 + $0x100] sm:$0xff]  ;;  %1640 = vmatpush.bf16.msra.mxu1 %v1991_v21  ;;  %v3002_v25 = vpack.c.bf16 %v659_v3, %v654_v35  ;;  %v1860_v21 = vld [vmem:[#allocation3 + $0x118] sm:$0xf0] }
  0xc3   :  { %v2972_v51 = vpack.c.bf16 %v648_v31, %v643_v59  ;;  %1492 = vmatpush.bf16.msra.mxu2 %v1807_v11  ;;  %v670_v33 = vld [vmem:[#allocation2 + $0x1d8] sm:$0xff]  ;;  %v1863_v27 = vor.u32 %v2058_v49, %v1860_v21  ;;  %v2040_v49 = vld [vmem:[#allocation3 + $0x84] sm:$0xf]  ;;  %v1788_v21 = vld [vmem:[#allocation3 + $0x88] sm:$0xf0] }
  0xc4   :  { %v1924_v35 = vld [vmem:[#allocation3 + $0x198] sm:$0xf0] }
  0xc5   :  { %v658_v20 = vld [vmem:[#allocation2 + $0x178] sm:$0xff]  ;;  %1541 = vmatpush.bf16.msra.mxu3 %v1871_v61 }
  0xc6   :  { %1285 = vmatmul.bf16.gmra.mxu3 %v2923_v56  ;;  %v653_v30 = vld [vmem:[#allocation2 + $0x150] sm:$0xff] }
  0xc9   :  { %1265 = vmatmul.bf16.gmra.mxu1 %v2926_v34  ;;  %1542 = vmatpush.bf16.msra.mxu3 %v1863_v27  ;;  %v1852_v27 = vld [vmem:[#allocation3 + $0x108] sm:$0xf0] }
  0xce   :  { %1299 = vmatmul.bf16.vlgmr.msrb.gmra.mxu2 %v2931_v4 }
  0xd1   :  { %2008 = vmatmul.msk.bf16.vlgmr.msrb.gmra.mxu0 %vm111_vm0, %v2933_v7 }
  0xd6   :  { %1348 = vmatmul.bf16.vlgmr.msrb.gmra.mxu3 %v2939_v23 }
  0xd9   :  { %1446 = vmatmul.bf16.vlgmr.msrb.gmra.mxu1 %v2764_v28  ;;  %v624_v28 = vld [vmem:[#allocation2 + $0x68] sm:$0xff] }
  0xda   :  { %v2953_v50 = vpack.c.bf16 %v629_v15, %v624_v28  ;;  %v644_v15 = vld [vmem:[#allocation2 + $0x108] sm:$0xff]  ;;  %v649_v28 = vld [vmem:[#allocation2 + $0x130] sm:$0xff] }
  0xdb   :  { %v2979_v17 = vpack.c.bf16 %v649_v28, %v644_v15  ;;  %v1796_v15 = vld [vmem:[#allocation3 + $0x98] sm:$0xf0]  ;;  %v663_v28 = vld [vmem:[#allocation2 + $0x1a0] sm:$0xff] }
  0xde   :  { %1304 = vmatmul.bf16.gmra.mxu2 %v2944_v5 }
  0xe1   :  { %2009 = vmatmul.msk.bf16.gmra.mxu0 %vm111_vm0, %v2946_v32 }
  0xe6   :  { %1353 = vmatmul.bf16.gmra.mxu3 %v2953_v50 }
  0xe9   :  { %1451 = vmatmul.bf16.gmra.mxu1 %v2808_v22  ;;  %v1951_v22 = vor.u32 %v2080_v10, %v1948_v12  ;;  %v2985_v10 = vpack.c.bf16 %v658_v20, %v653_v30  ;;  %v2990_v12 = vld [vmem:[%s3310_s2] sm:$0x3] }
  0xeb   :  { %1588 = vmatpush.bf16.msra.mxu0 %v1951_v22  ;;  %v2995_v22 = vperm.slane %v2990_v12, 0 }
  0xee   :  { %1309 = vmatmul.bf16.gmra.mxu2 %v2959_v0 }
  0xf1   :  { %2010 = vmatmul.msk.bf16.gmra.mxu0 %vm111_vm0, %v2961_v8 }
  0xf6   :  { %1358 = vmatmul.bf16.gmra.mxu3 %v2966_v42 }
  0xf9   :  { %1456 = vmatmul.bf16.gmra.mxu1 %v2879_v47  ;;  %v1940_v47 = vld [vmem:[#allocation3 + $0x1b8] sm:$0xf0]  ;;  %v2233_v60 = vpop.permute.xlu2 %2232 }
  0xfa   :  { %v1943_v52 = vor.u32 %v2078_v36, %v1940_v47  ;;  %v2235_v40 = vunpack.i.h.bf16 %v2233_v60  ;;  %v2234_v45 = vunpack.i.l.bf16 %v2233_v60  ;;  %v668_v36 = vld [vmem:[#allocation2 + $0x1c8] sm:$0xff] }
  0xfb   :  { %v3012_v11 = vpack.c.bf16 %v668_v36, %v663_v28 }
  0xfc   :  { %1589 = vmatpush.bf16.msra.mxu0 %v1943_v52  ;;  %528 = vst.msk [vmem:[#allocation2 + $0x218] sm:$0xff] %vm257_vm3, %v2235_v40  ;;  %v1799_v52 = vor.u32 %v2042_v37, %v1796_v15 }
  0xfd   :  { %527 = vst.msk [vmem:[#allocation2 + $0x1f0] sm:$0xff] %vm257_vm3, %v2234_v45  ;;  %v665_v45 = vld [vmem:[#allocation2 + $0x1b0] sm:$0xff] }
  0xfe   :  { %1314 = vmatmul.bf16.gmra.mxu2 %v2972_v51  ;;  %v3016_v44 = vpack.c.bf16 %v670_v33, %v665_v45  ;;  %v1791_v45 = vor.u32 %v2040_v49, %v1788_v21  ;;  %v2056_v33 = vld [vmem:[#allocation3 + $0x104] sm:$0xf] }
  0xff   :  { %1493 = vmatpush.bf16.msra.mxu2 %v1799_v52 }
 0x101   :  { %2011 = vmatmul.msk.bf16.gmra.mxu0 %vm111_vm0, %v2974_v46 }
 0x103   :  { %1494 = vmatpush.bf16.msra.mxu2 %v1791_v45 }
 0x106   :  { %1363 = vmatmul.bf16.gmra.mxu3 %v2979_v17 }
 0x109   :  { %1461 = vmatmul.bf16.gmra.mxu1 %v2919_v1  ;;  %v2076_v1 = vld [vmem:[#allocation3 + $0x1a4] sm:$0xf]  ;;  %v2238_v41 = vpop.permute.xlu0 %2237 }
 0x10a   :  { %v1935_v39 = vor.u32 %v2076_v1, %v1932_v13  ;;  %v2240_v47 = vunpack.i.h.bf16 %v2238_v41  ;;  %v2239_v43 = vunpack.i.l.bf16 %v2238_v41 }
 0x10c   :  { %1590 = vmatpush.bf16.msra.mxu0 %v1935_v39  ;;  %530 = vst.msk [vmem:[#allocation2 + $0x268] sm:$0xff] %vm257_vm3, %v2240_v47 }
 0x10d   :  { %529 = vst.msk [vmem:[#allocation2 + $0x240] sm:$0xff] %vm257_vm3, %v2239_v43 }
 0x10e   :  { %v1202_v58 = vpop.f32.mrf.mxu0  ;;  %1319 = vmatmul.bf16.gmra.mxu2 %v2985_v10 }
 0x10f   :  { %v1203_v59 = vadd.f32 %v1202_v58, %v2995_v22  ;;  %v669_v58 = vld [vmem:[#allocation2 + $0x1d0] sm:$0xff] }
 0x111   :  { %2012 = vmatmul.msk.bf16.gmra.mxu0 %vm111_vm0, %v2992_v57  ;;  %v1222_v9 = vpop.f32.mrf.mxu2 }
 0x112   :  { %v1223_v31 = vadd.f32 %v1222_v9, %v2995_v22  ;;  %v2074_v9 = vld [vmem:[#allocation3 + $0x194] sm:$0xf] }
 0x116   :  { %v1204_v19 = vpop.f32.mrf.mxu0  ;;  %v1251_v26 = vpop.f32.mrf.mxu1  ;;  %1368 = vmatmul.bf16.gmra.mxu3 %v3002_v25 }
 0x117   :  { %v3004_v55 = vadd.f32 %v1251_v26, %v1203_v59  ;;  %v2243_v61 = vpop.permute.xlu1 %2242  ;;  %v664_v59 = vld [vmem:[#allocation2 + $0x1a8] sm:$0xff] }
 0x118   :  { %v2245_v1 = vunpack.i.h.bf16 %v2243_v61  ;;  %v2244_v13 = vunpack.i.l.bf16 %v2243_v61  ;;  %v1980_v26 = vld [vmem:[#allocation3 + $0x208] sm:$0xf0]  ;;  %v3029_v36 = vpack.c.bf16 %v669_v58, %v664_v59  ;;  %v1855_v61 = vor.u32 %v2056_v33, %v1852_v27  ;;  %v683_v33 = vld [vmem:[#allocation2 + $0x240] sm:$0xff] }
 0x119   :  { %1466 = vmatmul.bf16.gmra.mxu1 %v2758_v16  ;;  %v1224_v60 = vpop.f32.mrf.mxu2  ;;  %v1271_v40 = vpop.f32.mrf.mxu3  ;;  %v1205_v16 = vadd.f32 %v1204_v19, %v2995_v22  ;;  %v2088_v19 = vld [vmem:[#allocation3 + $0x204] sm:$0xf]  ;;  %v688_v27 = vld [vmem:[#allocation2 + $0x268] sm:$0xff] }
 0x11a   :  { %v1225_v30 = vadd.f32 %v1224_v60, %v2995_v22  ;;  %v3010_v20 = vadd.f32 %v1271_v40, %v1223_v31  ;;  %v1927_v31 = vor.u32 %v2074_v9, %v1924_v35  ;;  %584 = vst.msk [vmem:[#allocation2 + $0x270] sm:$0xff] %vm257_vm3, %v2245_v1  ;;  %v1983_v28 = vor.u32 %v2088_v19, %v1980_v26  ;;  %v673_v60 = vld [vmem:[#allocation2 + $0x1f0] sm:$0xff]  ;;  %v678_v40 = vld [vmem:[#allocation2 + $0x218] sm:$0xff]  ;;  %v2072_v35 = vld [vmem:[#allocation3 + $0x184] sm:$0xf] }
 0x11b   :  { %583 = vst.msk [vmem:[#allocation2 + $0x248] sm:$0xff] %vm257_vm3, %v2244_v13  ;;  %v3039_v9 = vpack.c.bf16 %v678_v40, %v673_v60  ;;  %1543 = vmatpush.bf16.msra.mxu3 %v1855_v61 }
 0x11c   :  { %1591 = vmatpush.bf16.msra.mxu0 %v1927_v31  ;;  %1641 = vmatpush.bf16.msra.mxu1 %v1983_v28  ;;  %v679_v28 = vld [vmem:[#allocation2 + $0x220] sm:$0xff] }
 0x11e   :  { %v1207_v53 = vpop.f32.mrf.mxu0  ;;  %v1253_v54 = vpop.f32.mrf.mxu1  ;;  %1324 = vmatmul.bf16.gmra.mxu2 %v3012_v11 }
 0x11f   :  { %v3018_v2 = vadd.f32 %v1253_v54, %v1205_v16  ;;  %v1208_v41 = vadd.f32 %v1207_v53, %v2995_v22  ;;  %v675_v53 = vld [vmem:[#allocation2 + $0x200] sm:$0xff]  ;;  %v680_v54 = vld [vmem:[#allocation2 + $0x228] sm:$0xff] }
 0x121   :  { %2013 = vmatmul.msk.bf16.gmra.mxu0 %vm111_vm0, %v3016_v44  ;;  %v1227_v3 = vpop.f32.mrf.mxu2  ;;  %v1273_v39 = vpop.f32.mrf.mxu3 }
 0x122   :  { %v1228_v37 = vadd.f32 %v1227_v3, %v2995_v22  ;;  %v3025_v15 = vadd.f32 %v1273_v39, %v1225_v30  ;;  %v1916_v3 = vld [vmem:[#allocation3 + $0x188] sm:$0xf0]  ;;  %v3041_v39 = vpack.c.bf16 %v680_v54, %v675_v53  ;;  %v685_v53 = vld [vmem:[#allocation2 + $0x250] sm:$0xff]  ;;  %v690_v54 = vld [vmem:[#allocation2 + $0x278] sm:$0xff] }
 0x126   :  { %v1209_v47 = vpop.f32.mrf.mxu0  ;;  %v1256_v43 = vpop.f32.mrf.mxu1  ;;  %1373 = vmatmul.bf16.gmra.mxu3 %v3029_v36 }
 0x127   :  { %v3031_v52 = vadd.f32 %v1256_v43, %v1208_v41  ;;  %v1210_v58 = vadd.f32 %v1209_v47, %v2995_v22 }
 0x129   :  { %1471 = vmatmul.bf16.gmra.mxu1 %v2795_v29  ;;  %v1229_v30 = vpop.f32.mrf.mxu2  ;;  %v1276_v16 = vpop.f32.mrf.mxu3  ;;  %v1919_v29 = vor.u32 %v2072_v35, %v1916_v3  ;;  %v3062_v35 = vpack.c.bf16 %v688_v27, %v683_v33  ;;  %v3064_v3 = vpack.c.bf16 %v690_v54, %v685_v53 }
 0x12a   :  { %v1230_v1 = vadd.f32 %v1229_v30, %v2995_v22  ;;  %v3037_v13 = vadd.f32 %v1276_v16, %v1228_v37  ;;  %v674_v37 = vld [vmem:[#allocation2 + $0x1f8] sm:$0xff] }
 0x12b   :  { %1592 = vmatpush.bf16.msra.mxu0 %v1919_v29  ;;  %v3052_v21 = vpack.c.bf16 %v679_v28, %v674_v37 }
 0x12e   :  { %v1212_v59 = vpop.f32.mrf.mxu0  ;;  %v1258_v31 = vpop.f32.mrf.mxu1  ;;  %1329 = vmatmul.bf16.gmra.mxu2 %v3039_v9 }
 0x12f   :  { %v3043_v19 = vadd.f32 %v1258_v31, %v1210_v58  ;;  %v1213_v47 = vadd.f32 %v1212_v59, %v2995_v22 }
 0x131   :  { %2014 = vmatmul.msk.bf16.gmra.mxu0 %vm111_vm0, %v3041_v39  ;;  %v1232_v26 = vpop.f32.mrf.mxu2  ;;  %v1278_v41 = vpop.f32.mrf.mxu3 }
 0x132   :  { %v1233_v43 = vadd.f32 %v1232_v26, %v2995_v22  ;;  %v3050_v49 = vadd.f32 %v1278_v41, %v1230_v1  ;;  %v689_v26 = vld [vmem:[#allocation2 + $0x270] sm:$0xff] }
 0x136   :  { %v1214_v60 = vpop.f32.mrf.mxu0  ;;  %v1261_v40 = vpop.f32.mrf.mxu1  ;;  %1378 = vmatmul.bf16.gmra.mxu3 %v3052_v21 }
 0x137   :  { %v3054_v45 = vadd.f32 %v1261_v40, %v1213_v47  ;;  %v1215_v61 = vadd.f32 %v1214_v60, %v2995_v22 }
 0x139   :  { %1476 = vmatmul.bf16.gmra.mxu1 %v2873_v24  ;;  %v1234_v30 = vpop.f32.mrf.mxu2  ;;  %v1281_v16 = vpop.f32.mrf.mxu3  ;;  %v684_v24 = vld [vmem:[#allocation2 + $0x248] sm:$0xff] }
 0x13a   :  { %v1235_v58 = vadd.f32 %v1234_v30, %v2995_v22  ;;  %v3060_v1 = vadd.f32 %v1281_v16, %v1233_v43  ;;  %v3075_v60 = vpack.c.bf16 %v689_v26, %v684_v24 }
 0x13e   :  { %v1217_v29 = vpop.f32.mrf.mxu0  ;;  %v1263_v59 = vpop.f32.mrf.mxu1  ;;  %1334 = vmatmul.bf16.gmra.mxu2 %v3062_v35 }
 0x13f   :  { %v3066_v31 = vadd.f32 %v1263_v59, %v1215_v61  ;;  %v1218_v28 = vadd.f32 %v1217_v29, %v2995_v22 }
 0x141   :  { %2015 = vmatmul.msk.bf16.gmra.mxu0 %vm111_vm0, %v3064_v3  ;;  %v1237_v41 = vpop.f32.mrf.mxu2  ;;  %v1283_v37 = vpop.f32.mrf.mxu3 }
 0x142   :  { %v1238_v47 = vadd.f32 %v1237_v41, %v2995_v22  ;;  %v3073_v43 = vadd.f32 %v1283_v37, %v1235_v58 }
 0x146   :  { %v1219_v40 = vpop.f32.mrf.mxu0  ;;  %v1266_v33 = vpop.f32.mrf.mxu1  ;;  %1383 = vmatmul.bf16.gmra.mxu3 %v3075_v60 }
 0x147   :  { %v3077_v27 = vadd.f32 %v1266_v33, %v1218_v28  ;;  %v1220_v53 = vadd.f32 %v1219_v40, %v2995_v22 }
 0x149   :  { %1481 = vmatmul.bf16.gmra.mxu1 %v2915_v62  ;;  %v1239_v30 = vpop.f32.mrf.mxu2  ;;  %v1286_v16 = vpop.f32.mrf.mxu3 }
 0x14a   :  { %v1240_v54 = vadd.f32 %v1239_v30, %v2995_v22  ;;  %v3083_v61 = vadd.f32 %v1286_v16, %v1238_v47 }
 0x14e   :  { %v1268_v58 = vpop.f32.mrf.mxu1  ;;  %v1398_v29 = vpop.f32.mrf.mxu0  ;;  %1495 = vmatmul.bf16.vlgmr.msra.gmra.mxu2 %v2783_v6 }
 0x14f   :  { %v3085_v59 = vadd.f32 %v1268_v58, %v1220_v53 }
 0x151   :  { %1593 = vmatmul.bf16.vlgmr.msra.gmra.mxu0 %v2939_v23  ;;  %v1288_v24 = vpop.f32.mrf.mxu3  ;;  %v1300_v26 = vpop.f32.mrf.mxu2 }
 0x152   :  { %v3089_v41 = vadd.f32 %v1288_v24, %v1240_v54  ;;  %v1301_v62 = vadd.f32 %v1300_v26, %v3004_v55 }
 0x156   :  { %v1400_v37 = vpop.f32.mrf.mxu0  ;;  %v3092_v28 = vpop.f32.mrf.mxu1  ;;  %1544 = vmatmul.bf16.vlgmr.msra.gmra.mxu3 %v2931_v4 }
 0x159   :  { %2016 = vmatmul.msk.bf16.vlgmr.msra.gmra.mxu1 %vm111_vm0, %v2933_v7  ;;  %v1302_v22 = vpop.f32.mrf.mxu2  ;;  %v1349_v47 = vpop.f32.mrf.mxu3 }
 0x15a   :  { %v1303_v6 = vadd.f32 %v1302_v22, %v3018_v2  ;;  %v1350_v40 = vadd.f32 %v1349_v47, %v1301_v62 }
 0x15c   :  { %v3098_v23 = vadd.f32 %v1398_v29, %v1350_v40 }
 0x15e   :  { %v1403_v33 = vpop.f32.mrf.mxu0  ;;  %v3100_v30 = vpop.f32.mrf.mxu1  ;;  %1500 = vmatmul.bf16.gmra.mxu2 %v2838_v14 }
 0x161   :  { %1598 = vmatmul.bf16.gmra.mxu0 %v2953_v50  ;;  %v1305_v55 = vpop.f32.mrf.mxu2  ;;  %v1351_v16 = vpop.f32.mrf.mxu3 }
 0x162   :  { %v1306_v4 = vadd.f32 %v1305_v55, %v3031_v52  ;;  %v1352_v53 = vadd.f32 %v1351_v16, %v1303_v6 }
 0x164   :  { %v3105_v7 = vadd.f32 %v1400_v37, %v1352_v53 }
 0x166   :  { %v1405_v54 = vpop.f32.mrf.mxu0  ;;  %v3107_v58 = vpop.f32.mrf.mxu1  ;;  %1549 = vmatmul.bf16.gmra.mxu3 %v2944_v5 }
 0x169   :  { %2017 = vmatmul.msk.bf16.gmra.mxu1 %vm111_vm0, %v2946_v32  ;;  %v1307_v2 = vpop.f32.mrf.mxu2  ;;  %v1354_v29 = vpop.f32.mrf.mxu3 }
 0x16a   :  { %v1308_v14 = vadd.f32 %v1307_v2, %v3043_v19  ;;  %v1355_v50 = vadd.f32 %v1354_v29, %v1306_v4 }
 0x16c   :  { %v3113_v24 = vadd.f32 %v1403_v33, %v1355_v50 }
 0x16e   :  { %v1408_v26 = vpop.f32.mrf.mxu0  ;;  %v3115_v52 = vpop.f32.mrf.mxu1  ;;  %1505 = vmatmul.bf16.gmra.mxu2 %v2902_v18 }
 0x171   :  { %1603 = vmatmul.bf16.gmra.mxu0 %v2966_v42  ;;  %v1310_v62 = vpop.f32.mrf.mxu2  ;;  %v1356_v37 = vpop.f32.mrf.mxu3 }
 0x172   :  { %v1311_v5 = vadd.f32 %v1310_v62, %v3054_v45  ;;  %v1357_v22 = vadd.f32 %v1356_v37, %v1308_v14 }
 0x174   :  { %v3120_v32 = vadd.f32 %v1405_v54, %v1357_v22 }
 0x176   :  { %v1410_v47 = vpop.f32.mrf.mxu0  ;;  %v3122_v6 = vpop.f32.mrf.mxu1  ;;  %1554 = vmatmul.bf16.gmra.mxu3 %v2959_v0 }
 0x179   :  { %2018 = vmatmul.msk.bf16.gmra.mxu1 %vm111_vm0, %v2961_v8  ;;  %v1312_v19 = vpop.f32.mrf.mxu2  ;;  %v1359_v40 = vpop.f32.mrf.mxu3 }
 0x17a   :  { %v1313_v18 = vadd.f32 %v1312_v19, %v3066_v31  ;;  %v1360_v42 = vadd.f32 %v1359_v40, %v1311_v5 }
 0x17c   :  { %v3128_v33 = vadd.f32 %v1408_v26, %v1360_v42 }
 0x17e   :  { %v1413_v55 = vpop.f32.mrf.mxu0  ;;  %v3130_v45 = vpop.f32.mrf.mxu1  ;;  %1510 = vmatmul.bf16.gmra.mxu2 %v2926_v34 }
 0x181   :  { %1608 = vmatmul.bf16.gmra.mxu0 %v2979_v17  ;;  %v1315_v16 = vpop.f32.mrf.mxu2  ;;  %v1361_v4 = vpop.f32.mrf.mxu3 }
 0x182   :  { %v1316_v0 = vadd.f32 %v1315_v16, %v3077_v27  ;;  %v1362_v53 = vadd.f32 %v1361_v4, %v1313_v18 }
 0x184   :  { %v3135_v8 = vadd.f32 %v1410_v47, %v1362_v53 }
 0x186   :  { %v1415_v54 = vpop.f32.mrf.mxu0  ;;  %v3137_v2 = vpop.f32.mrf.mxu1  ;;  %1559 = vmatmul.bf16.gmra.mxu3 %v2972_v51 }
 0x189   :  { %2019 = vmatmul.msk.bf16.gmra.mxu1 %vm111_vm0, %v2974_v46  ;;  %v1317_v31 = vpop.f32.mrf.mxu2  ;;  %v1364_v29 = vpop.f32.mrf.mxu3 }
 0x18a   :  { %v1318_v34 = vadd.f32 %v1317_v31, %v3085_v59  ;;  %v1365_v17 = vadd.f32 %v1364_v29, %v1316_v0 }
 0x18c   :  { %v3143_v14 = vadd.f32 %v1413_v55, %v1365_v17 }
 0x18e   :  { %v1418_v50 = vpop.f32.mrf.mxu0  ;;  %v3145_v27 = vpop.f32.mrf.mxu1  ;;  %1515 = vmatmul.bf16.gmra.mxu2 %v2776_v48 }
 0x191   :  { %1613 = vmatmul.bf16.gmra.mxu0 %v3002_v25  ;;  %v1320_v26 = vpop.f32.mrf.mxu2  ;;  %v1366_v62 = vpop.f32.mrf.mxu3 }
 0x192   :  { %v1321_v51 = vadd.f32 %v1320_v26, %v3010_v20  ;;  %v1367_v37 = vadd.f32 %v1366_v62, %v1318_v34 }
 0x194   :  { %v3150_v46 = vadd.f32 %v1415_v54, %v1367_v37 }
 0x196   :  { %v1420_v5 = vpop.f32.mrf.mxu0  ;;  %v3152_v22 = vpop.f32.mrf.mxu1  ;;  %1564 = vmatmul.bf16.gmra.mxu3 %v2985_v10 }
 0x199   :  { %2020 = vmatmul.msk.bf16.gmra.mxu1 %vm111_vm0, %v2992_v57  ;;  %v1322_v59 = vpop.f32.mrf.mxu2  ;;  %v1369_v47 = vpop.f32.mrf.mxu3 }
 0x19a   :  { %v1323_v48 = vadd.f32 %v1322_v59, %v3025_v15  ;;  %v1370_v25 = vadd.f32 %v1369_v47, %v1321_v51 }
 0x19c   :  { %v3158_v19 = vadd.f32 %v1418_v50, %v1370_v25 }
 0x19e   :  { %v1423_v40 = vpop.f32.mrf.mxu0  ;;  %v3160_v20 = vpop.f32.mrf.mxu1  ;;  %1520 = vmatmul.bf16.gmra.mxu2 %v2832_v63 }
 0x1a1   :  { %1618 = vmatmul.bf16.gmra.mxu0 %v3029_v36  ;;  %v1325_v18 = vpop.f32.mrf.mxu2  ;;  %v1371_v42 = vpop.f32.mrf.mxu3 }
 0x1a2   :  { %v1326_v10 = vadd.f32 %v1325_v18, %v3037_v13  ;;  %v1372_v55 = vadd.f32 %v1371_v42, %v1323_v48 }
 0x1a4   :  { %v3165_v57 = vadd.f32 %v1420_v5, %v1372_v55  ;;  %v3208_v55 = vperm.slane %v2990_v12, 1 }
 0x1a6   :  { %v1425_v16 = vpop.f32.mrf.mxu0  ;;  %v3167_v4 = vpop.f32.mrf.mxu1  ;;  %1569 = vmatmul.bf16.gmra.mxu3 %v3012_v11 }
 0x1a9   :  { %2021 = vmatmul.msk.bf16.gmra.mxu1 %vm111_vm0, %v3016_v44  ;;  %v1327_v15 = vpop.f32.mrf.mxu2  ;;  %v1374_v0 = vpop.f32.mrf.mxu3 }
 0x1aa   :  { %v1328_v63 = vadd.f32 %v1327_v15, %v3050_v49  ;;  %v1375_v36 = vadd.f32 %v1374_v0, %v1326_v10  ;;  %v1448_v0 = vadd.f32 %v3092_v28, %v3208_v55 }
 0x1ac   :  { %v3173_v53 = vadd.f32 %v1423_v40, %v1375_v36 }
 0x1ae   :  { %v1428_v54 = vpop.f32.mrf.mxu0  ;;  %v3175_v13 = vpop.f32.mrf.mxu1  ;;  %1525 = vmatmul.bf16.gmra.mxu2 %v2896_v38 }
 0x1b1   :  { %1623 = vmatmul.bf16.gmra.mxu0 %v3052_v21  ;;  %v1330_v31 = vpop.f32.mrf.mxu2  ;;  %v1376_v29 = vpop.f32.mrf.mxu3 }
 0x1b2   :  { %v1331_v11 = vadd.f32 %v1330_v31, %v3060_v1  ;;  %v1377_v34 = vadd.f32 %v1376_v29, %v1328_v63 }
 0x1b4   :  { %v3180_v44 = vadd.f32 %v1425_v16, %v1377_v34  ;;  %v1450_v34 = vadd.f32 %v3100_v30, %v3208_v55 }
 0x1b6   :  { %v1430_v17 = vpop.f32.mrf.mxu0  ;;  %v3182_v50 = vpop.f32.mrf.mxu1  ;;  %1574 = vmatmul.bf16.gmra.mxu3 %v3039_v9 }
 0x1b9   :  { %2022 = vmatmul.msk.bf16.gmra.mxu1 %vm111_vm0, %v3041_v39  ;;  %v1332_v49 = vpop.f32.mrf.mxu2  ;;  %v1379_v26 = vpop.f32.mrf.mxu3 }
 0x1ba   :  { %v1333_v38 = vadd.f32 %v1332_v49, %v3073_v43  ;;  %v1380_v21 = vadd.f32 %v1379_v26, %v1331_v11 }
 0x1bc   :  { %v3188_v62 = vadd.f32 %v1428_v54, %v1380_v21 }
 0x1be   :  { %v1433_v51 = vpop.f32.mrf.mxu0  ;;  %v3190_v1 = vpop.f32.mrf.mxu1  ;;  %1530 = vmatmul.bf16.gmra.mxu2 %v2923_v56 }
 0x1c1   :  { %1628 = vmatmul.bf16.gmra.mxu0 %v3075_v60  ;;  %v1335_v37 = vpop.f32.mrf.mxu2  ;;  %v1381_v5 = vpop.f32.mrf.mxu3 }
 0x1c2   :  { %v1336_v9 = vadd.f32 %v1335_v37, %v3083_v61  ;;  %v1382_v59 = vadd.f32 %v1381_v5, %v1333_v38  ;;  %v1453_v5 = vadd.f32 %v3107_v58, %v3208_v55 }
 0x1c4   :  { %v3195_v39 = vadd.f32 %v1430_v17, %v1382_v59 }
 0x1c6   :  { %v1435_v47 = vpop.f32.mrf.mxu0  ;;  %v3197_v48 = vpop.f32.mrf.mxu1  ;;  %1579 = vmatmul.bf16.gmra.mxu3 %v3062_v35 }
 0x1c9   :  { %2023 = vmatmul.msk.bf16.gmra.mxu1 %vm111_vm0, %v3064_v3  ;;  %v1337_v43 = vpop.f32.mrf.mxu2  ;;  %v1384_v25 = vpop.f32.mrf.mxu3 }
 0x1ca   :  { %v1338_v56 = vadd.f32 %v1337_v43, %v3089_v41  ;;  %v1385_v60 = vadd.f32 %v1384_v25, %v1336_v9 }
 0x1cc   :  { %v3203_v40 = vadd.f32 %v1433_v51, %v1385_v60 }
 0x1ce   :  { %v3205_v18 = vpop.f32.mrf.mxu1  ;;  %v1594_v61 = vpop.f32.mrf.mxu0 }
 0x1d1   :  { %v1386_v42 = vpop.f32.mrf.mxu3  ;;  %v1496_v10 = vpop.f32.mrf.mxu2 }
 0x1d2   :  { %v1387_v16 = vadd.f32 %v1386_v42, %v1338_v56  ;;  %v1497_v41 = vadd.f32 %v1496_v10, %v1448_v0 }
 0x1d4   :  { %v3210_v35 = vadd.f32 %v1435_v47, %v1387_v16 }
 0x1d6   :  { %v1596_v15 = vpop.f32.mrf.mxu0  ;;  %v1643_v3 = vpop.f32.mrf.mxu1 }
 0x1d9   :  { %v1498_v63 = vpop.f32.mrf.mxu2  ;;  %v1545_v36 = vpop.f32.mrf.mxu3 }
 0x1da   :  { %v1546_v54 = vadd.f32 %v1545_v36, %v1497_v41  ;;  %v1499_v17 = vadd.f32 %v1498_v63, %v1450_v34  ;;  %v1458_v63 = vadd.f32 %v3122_v6, %v3208_v55 }
 0x1dc   :  { %v1595_v31 = vadd.f32 %v1594_v61, %v1546_v54  ;;  %v1455_v61 = vadd.f32 %v3115_v52, %v3208_v55 }
 0x1de   :  { %v1599_v29 = vpop.f32.mrf.mxu0  ;;  %v1645_v11 = vpop.f32.mrf.mxu1  ;;  %v1644_v12 = vadd.f32 %v1643_v3, %v1595_v31 }
 0x1e0   :  { %v1683_v49 = vpack.c.bf16 %v1644_v12, %v3098_v23 }
 0x1e1   :  { %v1501_v26 = vpop.f32.mrf.mxu2  ;;  %v1547_v38 = vpop.f32.mrf.mxu3 }
 0x1e2   :  { %1699 = vst [vmem:[%s3311_s3] sm:$0xff] %v1683_v49  ;;  %v1548_v28 = vadd.f32 %v1547_v38, %v1499_v17  ;;  %v1502_v59 = vadd.f32 %v1501_v26, %v1453_v5  ;;  %v1460_v17 = vadd.f32 %v3130_v45, %v3208_v55  ;;  %v1463_v5 = vadd.f32 %v3137_v2, %v3208_v55 }
 0x1e4   :  { %v1597_v21 = vadd.f32 %v1596_v15, %v1548_v28 }
 0x1e6   :  { %v1601_v51 = vpop.f32.mrf.mxu0  ;;  %v1648_v37 = vpop.f32.mrf.mxu1  ;;  %v1646_v9 = vadd.f32 %v1645_v11, %v1597_v21 }
 0x1e8   :  { %v1684_v30 = vpack.c.bf16 %v1646_v9, %v3105_v7 }
 0x1e9   :  { %v1503_v47 = vpop.f32.mrf.mxu2  ;;  %v1550_v43 = vpop.f32.mrf.mxu3 }
 0x1ea   :  { %1700 = vst [vmem:[%s3311_s3 + $0x8] sm:$0xff] %v1684_v30  ;;  %v1551_v23 = vadd.f32 %v1550_v43, %v1502_v59  ;;  %v1504_v10 = vadd.f32 %v1503_v47, %v1455_v61 }
 0x1ec   :  { %v1600_v25 = vadd.f32 %v1599_v29, %v1551_v23 }
 0x1ee   :  { %v1604_v56 = vpop.f32.mrf.mxu0  ;;  %v1650_v60 = vpop.f32.mrf.mxu1  ;;  %v1649_v42 = vadd.f32 %v1648_v37, %v1600_v25 }
 0x1f0   :  { %v1685_v58 = vpack.c.bf16 %v1649_v42, %v3113_v24 }
 0x1f1   :  { %v1506_v16 = vpop.f32.mrf.mxu2  ;;  %v1552_v15 = vpop.f32.mrf.mxu3 }
 0x1f2   :  { %1701 = vst [vmem:[%s3311_s3 + $0x10] sm:$0xff] %v1685_v58  ;;  %v1553_v7 = vadd.f32 %v1552_v15, %v1504_v10  ;;  %v1507_v54 = vadd.f32 %v1506_v16, %v1458_v63  ;;  %v1468_v15 = vadd.f32 %v3152_v22, %v3208_v55 }
 0x1f4   :  { %v1602_v3 = vadd.f32 %v1601_v51, %v1553_v7 }
 0x1f6   :  { %v1606_v0 = vpop.f32.mrf.mxu0  ;;  %v1653_v41 = vpop.f32.mrf.mxu1  ;;  %v1651_v36 = vadd.f32 %v1650_v60, %v1602_v3 }
 0x1f8   :  { %v1686_v52 = vpack.c.bf16 %v1651_v36, %v3120_v32 }
 0x1f9   :  { %v1508_v31 = vpop.f32.mrf.mxu2  ;;  %v1555_v29 = vpop.f32.mrf.mxu3 }
 0x1fa   :  { %1702 = vst [vmem:[%s3311_s3 + $0x18] sm:$0xff] %v1686_v52  ;;  %v1556_v24 = vadd.f32 %v1555_v29, %v1507_v54  ;;  %v1509_v26 = vadd.f32 %v1508_v31, %v1460_v17  ;;  %v1470_v52 = vadd.f32 %v3160_v20, %v3208_v55 }
 0x1fc   :  { %v1605_v11 = vadd.f32 %v1604_v56, %v1556_v24  ;;  %v1465_v56 = vadd.f32 %v3145_v27, %v3208_v55 }
 0x1fe   :  { %v1609_v34 = vpop.f32.mrf.mxu0  ;;  %v1655_v12 = vpop.f32.mrf.mxu1  ;;  %v1654_v49 = vadd.f32 %v1653_v41, %v1605_v11 }
 0x200   :  { %v1687_v6 = vpack.c.bf16 %v1654_v49, %v3128_v33  ;;  %v1473_v49 = vadd.f32 %v3167_v4, %v3208_v55 }
 0x201   :  { %v1511_v38 = vpop.f32.mrf.mxu2  ;;  %v1557_v28 = vpop.f32.mrf.mxu3 }
 0x202   :  { %1703 = vst [vmem:[%s3311_s3 + $0x20] sm:$0xff] %v1687_v6  ;;  %v1558_v32 = vadd.f32 %v1557_v28, %v1509_v26  ;;  %v1512_v59 = vadd.f32 %v1511_v38, %v1463_v5 }
 0x204   :  { %v1607_v21 = vadd.f32 %v1606_v0, %v1558_v32 }
 0x206   :  { %v1611_v51 = vpop.f32.mrf.mxu0  ;;  %v1658_v37 = vpop.f32.mrf.mxu1  ;;  %v1656_v9 = vadd.f32 %v1655_v12, %v1607_v21 }
 0x208   :  { %v1688_v45 = vpack.c.bf16 %v1656_v9, %v3135_v8 }
 0x209   :  { %v1513_v30 = vpop.f32.mrf.mxu2  ;;  %v1560_v47 = vpop.f32.mrf.mxu3 }
 0x20a   :  { %1704 = vst [vmem:[%s3311_s3 + $0x28] sm:$0xff] %v1688_v45  ;;  %v1561_v33 = vadd.f32 %v1560_v47, %v1512_v59  ;;  %v1514_v61 = vadd.f32 %v1513_v30, %v1465_v56 }
 0x20c   :  { %v1610_v43 = vadd.f32 %v1609_v34, %v1561_v33  ;;  %v1478_v33 = vadd.f32 %v3182_v50, %v3208_v55 }
 0x20e   :  { %v1614_v23 = vpop.f32.mrf.mxu0  ;;  %v1660_v25 = vpop.f32.mrf.mxu1  ;;  %v1659_v60 = vadd.f32 %v1658_v37, %v1610_v43  ;;  %v1475_v37 = vadd.f32 %v3175_v13, %v3208_v55 }
 0x210   :  { %v1689_v2 = vpack.c.bf16 %v1659_v60, %v3143_v14 }
 0x211   :  { %v1516_v42 = vpop.f32.mrf.mxu2  ;;  %v1562_v10 = vpop.f32.mrf.mxu3 }
 0x212   :  { %1705 = vst [vmem:[%s3311_s3 + $0x30] sm:$0xff] %v1689_v2  ;;  %v1563_v8 = vadd.f32 %v1562_v10, %v1514_v61  ;;  %v1517_v0 = vadd.f32 %v1516_v42, %v1468_v15  ;;  %v1480_v2 = vadd.f32 %v3190_v1, %v3208_v55 }
 0x214   :  { %v1612_v58 = vadd.f32 %v1611_v51, %v1563_v8 }
 0x216   :  { %v1663_v16 = vpop.f32.mrf.mxu1  ;;  %v1661_v7 = vadd.f32 %v1660_v25, %v1612_v58  ;;  %v1616_v3 = vpop.f32.mrf.mxu0 }
 0x218   :  { %v1690_v27 = vpack.c.bf16 %v1661_v7, %v3150_v46 }
 0x219   :  { %v1518_v41 = vpop.f32.mrf.mxu2  ;;  %v1565_v63 = vpop.f32.mrf.mxu3 }
 0x21a   :  { %1706 = vst [vmem:[%s3311_s3 + $0x38] sm:$0xff] %v1690_v27  ;;  %v1566_v14 = vadd.f32 %v1565_v63, %v1517_v0  ;;  %v1519_v29 = vadd.f32 %v1518_v41, %v1470_v52  ;;  %v1485_v52 = vadd.f32 %v3205_v18, %v3208_v55 }
 0x21c   :  { %v1615_v36 = vadd.f32 %v1614_v23, %v1566_v14 }
 0x21e   :  { %v1665_v54 = vpop.f32.mrf.mxu1  ;;  %v1664_v31 = vadd.f32 %v1663_v16, %v1615_v36  ;;  %v1619_v24 = vpop.f32.mrf.mxu0 }
 0x220   :  { %v1691_v22 = vpack.c.bf16 %v1664_v31, %v3158_v19 }
 0x221   :  { %v1521_v11 = vpop.f32.mrf.mxu2  ;;  %v1567_v34 = vpop.f32.mrf.mxu3 }
 0x222   :  { %1707 = vst [vmem:[%s3311_s3 + $0x40] sm:$0xff] %v1691_v22  ;;  %v1568_v46 = vadd.f32 %v1567_v34, %v1519_v29  ;;  %v1522_v6 = vadd.f32 %v1521_v11, %v1473_v49 }
 0x224   :  { %v1617_v12 = vadd.f32 %v1616_v3, %v1568_v46  ;;  %v1483_v3 = vadd.f32 %v3197_v48, %v3208_v55 }
 0x226   :  { %v1668_v17 = vpop.f32.mrf.mxu1  ;;  %v1666_v26 = vadd.f32 %v1665_v54, %v1617_v12  ;;  %v1621_v32 = vpop.f32.mrf.mxu0 }
 0x228   :  { %v1692_v20 = vpack.c.bf16 %v1666_v26, %v3165_v57 }
 0x229   :  { %v1523_v38 = vpop.f32.mrf.mxu2  ;;  %v1570_v28 = vpop.f32.mrf.mxu3 }
 0x22a   :  { %1708 = vst [vmem:[%s3311_s3 + $0x48] sm:$0xff] %v1692_v20  ;;  %v1571_v19 = vadd.f32 %v1570_v28, %v1522_v6  ;;  %v1524_v9 = vadd.f32 %v1523_v38, %v1475_v37 }
 0x22c   :  { %v1620_v21 = vadd.f32 %v1619_v24, %v1571_v19 }
 0x22e   :  { %v1670_v51 = vpop.f32.mrf.mxu1  ;;  %v1669_v5 = vadd.f32 %v1668_v17, %v1620_v21  ;;  %v1624_v47 = vpop.f32.mrf.mxu0 }
 0x230   :  { %v1693_v4 = vpack.c.bf16 %v1669_v5, %v3173_v53 }
 0x231   :  { %v1526_v59 = vpop.f32.mrf.mxu2  ;;  %v1572_v45 = vpop.f32.mrf.mxu3 }
 0x232   :  { %1709 = vst [vmem:[%s3311_s3 + $0x50] sm:$0xff] %v1693_v4  ;;  %v1573_v57 = vadd.f32 %v1572_v45, %v1524_v9  ;;  %v1527_v25 = vadd.f32 %v1526_v59, %v1478_v33 }
 0x234   :  { %v1622_v30 = vadd.f32 %v1621_v32, %v1573_v57 }
 0x236   :  { %v1671_v43 = vadd.f32 %v1670_v51, %v1622_v30  ;;  %v1673_v23 = vpop.f32.mrf.mxu1  ;;  %v1626_v10 = vpop.f32.mrf.mxu0 }
 0x238   :  { %v1694_v13 = vpack.c.bf16 %v1671_v43, %v3180_v44 }
 0x239   :  { %v1528_v56 = vpop.f32.mrf.mxu2  ;;  %v1575_v60 = vpop.f32.mrf.mxu3 }
 0x23a   :  { %1710 = vst [vmem:[%s3311_s3 + $0x58] sm:$0xff] %v1694_v13  ;;  %v1576_v53 = vadd.f32 %v1575_v60, %v1527_v25  ;;  %v1529_v8 = vadd.f32 %v1528_v56, %v1480_v2 }
 0x23c   :  { %v1625_v61 = vadd.f32 %v1624_v47, %v1576_v53 }
 0x23e   :  { %v1674_v42 = vadd.f32 %v1673_v23, %v1625_v61  ;;  %v1675_v58 = vpop.f32.mrf.mxu1  ;;  %v1629_v41 = vpop.f32.mrf.mxu0 }
 0x240   :  { %v1695_v50 = vpack.c.bf16 %v1674_v42, %v3188_v62 }
 0x241   :  { %v1577_v16 = vpop.f32.mrf.mxu3  ;;  %v1531_v15 = vpop.f32.mrf.mxu2 }
 0x242   :  { %1711 = vst [vmem:[%s3311_s3 + $0x60] sm:$0xff] %v1695_v50  ;;  %v1578_v44 = vadd.f32 %v1577_v16, %v1529_v8  ;;  %v1532_v27 = vadd.f32 %v1531_v15, %v1483_v3 }
 0x244   :  { %v1627_v7 = vadd.f32 %v1626_v10, %v1578_v44 }
 0x246   :  { %v1676_v0 = vadd.f32 %v1675_v58, %v1627_v7  ;;  %v1678_v14 = vpop.f32.mrf.mxu1  ;;  %v1631_v24 = vpop.f32.mrf.mxu0 }
 0x248   :  { %v1696_v1 = vpack.c.bf16 %v1676_v0, %v3195_v39 }
 0x249   :  { %v1580_v63 = vpop.f32.mrf.mxu3  ;;  %v1533_v54 = vpop.f32.mrf.mxu2 }
 0x24a   :  { %1712 = vst [vmem:[%s3311_s3 + $0x68] sm:$0xff] %v1696_v1  ;;  %v1581_v62 = vadd.f32 %v1580_v63, %v1532_v27  ;;  %v1534_v29 = vadd.f32 %v1533_v54, %v1485_v52 }
 0x24c   :  { %v1630_v36 = vadd.f32 %v1629_v41, %v1581_v62 }
 0x24e   :  { %v1679_v31 = vadd.f32 %v1678_v14, %v1630_v36  ;;  %v1680_v34 = vpop.f32.mrf.mxu1 }
 0x250   :  { %v1697_v48 = vpack.c.bf16 %v1679_v31, %v3203_v40 }
 0x251   :  { %v1582_v22 = vpop.f32.mrf.mxu3 }
 0x252   :  { %1713 = vst [vmem:[%s3311_s3 + $0x70] sm:$0xff] %v1697_v48  ;;  %v1583_v39 = vadd.f32 %v1582_v22, %v1534_v29 }
 0x254   :  { %v1632_v11 = vadd.f32 %v1631_v24, %v1583_v39 }
 0x256   :  { %v1681_v46 = vadd.f32 %v1680_v34, %v1632_v11 }
 0x258   :  { %v1698_v12 = vpack.c.bf16 %v1681_v46, %v3210_v35 }
 0x25a   :  { %1714 = vst [vmem:[%s3311_s3 + $0x78] sm:$0xff] %v1698_v12 }
 0x25b   :  { %1719 = vsyncpa [#allocation4], 1 }

</bundles_post_ra>
